<compile_context>
chip_gen: v7x
topology: tpu7x:2x2x1
jax: 0.10.0
libtpu: 0.0.40
codegen_flags: <defaults>
</compile_context>

<pallas_src>
import jax
import jax.numpy as jnp
from jax.experimental import pallas as pl
from jax.experimental.pallas import tpu as pltpu


def mlp_kernel(x_ref, w1_ref, b1_ref, w2_ref, b2_ref, o_ref):
    # hidden = relu(x @ W1 + b1)   (f32 accumulate on the MXU)
    h = jnp.dot(x_ref[...], w1_ref[...], preferred_element_type=jnp.float32)
    h = jnp.maximum(h + b1_ref[...], 0.0)          # b1 is (1, hidden) -> broadcasts
    # out = hidden @ W2 + b2   (native out_dim width, no lane padding)
    o = jnp.dot(h, w2_ref[...], preferred_element_type=jnp.float32)
    o_ref[...] = (o + b2_ref[...]).astype(o_ref.dtype)


def _round_up(x, m):
    return ((x + m - 1) // m) * m


def _pick_tb(batch, tb_max=2048):
    """Batch-tile heuristic for a DMA / per-step-overhead-bound kernel."""
    if batch >= 512:
        # Enough rows for big tiles: use the fewest (>=2, even) grid steps so
        # v7x's two TensorCores both get work, capped at tb_max rows/step.
        n = max(2, pl.cdiv(batch, tb_max))
        n += n % 2
        tb = _round_up(pl.cdiv(batch, n), 256)
    else:
        # Small batch: one step covering everything (v5e/v6e regime).
        tb = _round_up(batch, 8)
    return min(tb, tb_max)


def mlp_forward(x, w1, b1, w2, b2, *, tb=None):
    """2-layer MLP forward: relu(x @ w1 + b1) @ w2 + b2."""
    batch, in_dim = x.shape
    hidden = w1.shape[1]
    out_dim = w2.shape[1]
    b1 = jnp.reshape(b1, (1, hidden))
    b2 = jnp.reshape(b2, (1, out_dim))

    if tb is None:
        tb = _pick_tb(batch)
    tb = max(8, _round_up(tb, 8))          # sublane-aligned tile
    tb = min(tb, _round_up(batch, 8))      # never bigger than needed
    n_tiles = pl.cdiv(batch, tb)           # partial last block handled by Pallas

    return pl.pallas_call(
        mlp_kernel,
        out_shape=jax.ShapeDtypeStruct((batch, out_dim), x.dtype),
        grid_spec=pl.GridSpec(
            grid=(n_tiles,),
            in_specs=[
                # x streams over the batch grid axis (double-buffered DMA);
                # the last block may be partial (padded reads).
                pl.BlockSpec((tb, in_dim), lambda i: (i, 0)),
                # Weights / biases: constant block index -> fetched once,
                # VMEM resident for every grid step.
                pl.BlockSpec((in_dim, hidden), lambda i: (0, 0)),
                pl.BlockSpec((1, hidden), lambda i: (0, 0)),
                pl.BlockSpec((hidden, out_dim), lambda i: (0, 0)),
                pl.BlockSpec((1, out_dim), lambda i: (0, 0)),
            ],
            # Native-width output: no lane padding, no post-call slicing;
            # the partial last block is masked on write.
            out_specs=pl.BlockSpec((tb, out_dim), lambda i: (i, 0)),
        ),
        compiler_params=pltpu.CompilerParams(
            # Batch tiles are independent rows: shard across TCs on v7x.
            dimension_semantics=("parallel",),
        ),
    )(x, w1, b1, w2, b2)


def reference_mlp(x, w1, b1, w2, b2):
    h = jnp.maximum(x @ w1 + b1, 0.0)
    return h @ w2 + b2


if __name__ == "__main__":
    key = jax.random.PRNGKey(0)
    kx, k1, k2, k3, k4 = jax.random.split(key, 5)

    # Small PGExplainer-like dims.  batch=600 exercises both the multi-tile
    # path (auto tb=512 -> 2 grid steps, one per TC on v7x) and the masked
    # partial last block (88 valid rows in step 1), with no wrapper-side
    # padding or slicing.
    batch, in_dim, hidden, out_dim = 600, 32, 64, 16

    x = jax.random.normal(kx, (batch, in_dim), dtype=jnp.float32)
    # Deterministic parameter init (Kaiming-ish scaling).
    w1 = jax.random.normal(k1, (in_dim, hidden), dtype=jnp.float32) * (1.0 / jnp.sqrt(in_dim))
    b1 = jax.random.normal(k2, (1, hidden), dtype=jnp.float32) * 0.01
    w2 = jax.random.normal(k3, (hidden, out_dim), dtype=jnp.float32) * (1.0 / jnp.sqrt(hidden))
    b2 = jax.random.normal(k4, (1, out_dim), dtype=jnp.float32) * 0.01

    out = mlp_forward(x, w1, b1, w2, b2)
    out = jax.block_until_ready(out)

    ref = reference_mlp(x, w1, b1, w2, b2)
    assert out.shape == (batch, out_dim), out.shape
    assert jnp.allclose(out, ref, atol=1e-5, rtol=1e-5), "mismatch vs reference"

    print("KERNEL_OK")
</pallas_src>

<mosaic_0001>
module attributes {stable_mosaic.version = 11 : i64} {
  func.func @mlp_kernel(%arg0: i32, %arg1: memref<512x32xf32, #tpu.memory_space<vmem>>, %arg2: memref<32x64xf32, #tpu.memory_space<vmem>>, %arg3: memref<1x64xf32, #tpu.memory_space<vmem>>, %arg4: memref<64x16xf32, #tpu.memory_space<vmem>>, %arg5: memref<1x16xf32, #tpu.memory_space<vmem>>, %arg6: memref<512x16xf32, #tpu.memory_space<vmem>>) attributes {dimension_semantics = [#tpu.dimension_semantics<parallel>], iteration_bounds = array<i64: 2>, scalar_prefetch = 0 : i64, scratch_operands = 0 : i64, tpu.core_type = #tpu.core_type<tc>, window_params = [{transform_indices = @transform_0, window_bounds = array<i64: 512, 32>}, {pipeline_mode = #tpu.pipeline_mode<synchronous>, transform_indices = @transform_1, window_bounds = array<i64: 32, 64>}, {pipeline_mode = #tpu.pipeline_mode<synchronous>, transform_indices = @transform_2, window_bounds = array<i64: 1, 64>}, {pipeline_mode = #tpu.pipeline_mode<synchronous>, transform_indices = @transform_3, window_bounds = array<i64: 64, 16>}, {pipeline_mode = #tpu.pipeline_mode<synchronous>, transform_indices = @transform_4, window_bounds = array<i64: 1, 16>}, {transform_indices = @transform_5, window_bounds = array<i64: 512, 16>}]} {
    %c0 = arith.constant 0 : index
    %c0_0 = arith.constant 0 : index
    %0 = vector.load %arg1[%c0, %c0_0] : memref<512x32xf32, #tpu.memory_space<vmem>>, vector<512x32xf32>
    %c0_1 = arith.constant 0 : index
    %c0_2 = arith.constant 0 : index
    %1 = vector.load %arg2[%c0_1, %c0_2] : memref<32x64xf32, #tpu.memory_space<vmem>>, vector<32x64xf32>
    %cst = arith.constant dense<0.000000e+00> : vector<512x64xf32>
    %2 = tpu.matmul %0, %1, %cst {dimension_numbers = #tpu.dot_dimension_numbers<[1], [0], [0], [1], [0, 0, 1, 1], [], []>} : vector<512x32xf32>, vector<32x64xf32>, vector<512x64xf32> -> vector<512x64xf32>
    %c0_3 = arith.constant 0 : index
    %c0_4 = arith.constant 0 : index
    %3 = vector.load %arg3[%c0_3, %c0_4] : memref<1x64xf32, #tpu.memory_space<vmem>>, vector<1x64xf32>
    %4 = vector.broadcast %3 : vector<1x64xf32> to vector<512x64xf32>
    %5 = arith.addf %2, %4 : vector<512x64xf32>
    %cst_5 = arith.constant 0.000000e+00 : f32
    %6 = vector.broadcast %cst_5 : f32 to vector<512x64xf32>
    %7 = arith.maximumf %5, %6 : vector<512x64xf32>
    %c0_6 = arith.constant 0 : index
    %c0_7 = arith.constant 0 : index
    %8 = vector.load %arg4[%c0_6, %c0_7] : memref<64x16xf32, #tpu.memory_space<vmem>>, vector<64x16xf32>
    %cst_8 = arith.constant dense<0.000000e+00> : vector<512x16xf32>
    %9 = tpu.matmul %7, %8, %cst_8 {dimension_numbers = #tpu.dot_dimension_numbers<[1], [0], [0], [1], [0, 0, 1, 1], [], []>} : vector<512x64xf32>, vector<64x16xf32>, vector<512x16xf32> -> vector<512x16xf32>
    %c0_9 = arith.constant 0 : index
    %c0_10 = arith.constant 0 : index
    %10 = vector.load %arg5[%c0_9, %c0_10] : memref<1x16xf32, #tpu.memory_space<vmem>>, vector<1x16xf32>
    %11 = vector.broadcast %10 : vector<1x16xf32> to vector<512x16xf32>
    %12 = arith.addf %9, %11 : vector<512x16xf32>
    %c0_11 = arith.constant 0 : index
    %c0_12 = arith.constant 0 : index
    %13 = vector.load %arg6[%c0_11, %c0_12] : memref<512x16xf32, #tpu.memory_space<vmem>>, vector<512x16xf32>
    tpu.vector_store %arg6[%c0_11, %c0_12], %12 {strides = array<i32>} : memref<512x16xf32, #tpu.memory_space<vmem>>, vector<512x16xf32>,
    return
  }
  func.func @transform_0(%arg0: i32) -> (i32, i32) {
    %c0_i32 = arith.constant 0 : i32
    %c0_i32_0 = arith.constant 0 : i32
    return %arg0, %c0_i32 : i32, i32
  }
  func.func @transform_1(%arg0: i32) -> (i32, i32) {
    %c0_i32 = arith.constant 0 : i32
    %c0_i32_0 = arith.constant 0 : i32
    %c0_i32_1 = arith.constant 0 : i32
    return %c0_i32, %c0_i32_0 : i32, i32
  }
  func.func @transform_2(%arg0: i32) -> (i32, i32) {
    %c0_i32 = arith.constant 0 : i32
    %c0_i32_0 = arith.constant 0 : i32
    %c0_i32_1 = arith.constant 0 : i32
    return %c0_i32, %c0_i32_0 : i32, i32
  }
  func.func @transform_3(%arg0: i32) -> (i32, i32) {
    %c0_i32 = arith.constant 0 : i32
    %c0_i32_0 = arith.constant 0 : i32
    %c0_i32_1 = arith.constant 0 : i32
    return %c0_i32, %c0_i32_0 : i32, i32
  }
  func.func @transform_4(%arg0: i32) -> (i32, i32) {
    %c0_i32 = arith.constant 0 : i32
    %c0_i32_0 = arith.constant 0 : i32
    %c0_i32_1 = arith.constant 0 : i32
    return %c0_i32, %c0_i32_0 : i32, i32
  }
  func.func @transform_5(%arg0: i32) -> (i32, i32) {
    %c0_i32 = arith.constant 0 : i32
    %c0_i32_0 = arith.constant 0 : i32
    return %arg0, %c0_i32 : i32, i32
  }
}

</mosaic_0001>

<bundles_post_ra>
// kernel: tpu_custom_call.1
= control target key start
LH: loop header
LB: loop body
LE: loop exit
PB: predicated region body
PF: predicated region fallthrough
CT: control target
= control target key end

     0   :  { %s2839_s18 = smov 0   ;;  %s2841_s19 = smov 0   ;;  %s3581_s0 = inlined_call_operand.vmem [shape: f32[600,32], index: 0, kind: input, shape index: {}]   ;;  %s3582_s1 = inlined_call_operand.vmem [shape: f32[32,64], index: 1, kind: input, shape index: {}]   ;;  %s3583_s2 = inlined_call_operand.vmem [shape: f32[1,64], index: 2, kind: input, shape index: {}]   ;;  %s3584_s3 = inlined_call_operand.vmem [shape: f32[64,16], index: 3, kind: input, shape index: {}]   ;;  %s3585_s4 = inlined_call_operand.vmem [shape: f32[1,16], index: 4, kind: input, shape index: {}]   ;;  %s3586_s5 = inlined_call_operand.vmem [shape: f32[600,16], index: 5, kind: output, shape index: {}]  }
   0x1   :  { %s2843_s20 = smov 0  }
   0x2 LB: > { %s2852_s21 = sadd.s32 4294967295, %s2775_s20   ;;  %s2854_s22 = sadd.s32 1, %s2775_s20   ;;  %s2775_s20 = sphi %s2843_s20, %s3595_s20   ;;  %s2771_s19 = sphi %s2841_s19, %s3594_s19   ;;  %s2767_s18 = sphi %s2839_s18, %s3593_s18  }
   0x3   : > { %s129_s23 = ssub.s32 %s2775_s20, %s2854_s22  ;;  %s132_s24 = sadd.s32 1, %s2771_s19 }
   0x4   : > { %p130_p0 = scmp.eq.s32.totalorder %s129_s23, 0  ;;  %p142_p1 = scmp.ne.s32.totalorder %s2771_s19, %s2767_s18 }
   0x5   : > { %p143_p2 = scmp.eq.s32.totalorder %s2852_s21, 1  ;;  %p2091_p3 = scmp.ge.s32.totalorder %s2775_s20, 1 }
   0x6   : > { %s2862_s25 = scalar_select %p130_p0, %s2771_s19, %s132_s24  }
   0x7   : > { %p2864_p4 = por %p143_p2, %p142_p1  ;;  %p196_p5 = scmp.lt.s32.totalorder %s2775_s20, 3 }
   0x9   : > { %p197_p6 = pnand %p2091_p3, %p196_p5 }
   0xa   : > { %v310_v0 = vld [vmem:[%s3582_s1] sm:$0xff] (!%p197_p6)  ;;  %v311_v1 = vld [vmem:[%s3582_s1 + $0x8] sm:$0xff] (!%p197_p6)  ;;  %v312_v2 = vld [vmem:[%s3582_s1 + $0x10] sm:$0xff] (!%p197_p6)  ;;  %s2878_s8 = sshll.u32 (!%p197_p6), %s2852_s21, 6  ;;  %vm321_vm0 = vcmask (!%p197_p6), 261120   ;;  %vm978_vm1 = vcmask (!%p197_p6), 523264  }
   0xb   : > { %200 = sbr.rel (%p197_p6) target bundleno = 654 (0x28e), region = 40  ;;  %v2601_v3 = vpack.c.bf16 (!%p197_p6), %v311_v1, %v310_v0  ;;  %v313_v4 = vld [vmem:[%s3582_s1 + $0x18] sm:$0xff] (!%p197_p6)  ;;  %p232_p7 = scmp.lt.s32.totalorder (!%p197_p6), %s2878_s8, 74  ;;  %v963_v18 = vld [vmem:[%s3584_s3] sm:$0xff] (!%p197_p6)  ;;  %v964_v19 = vld [vmem:[%s3584_s3 + $0x8] sm:$0xff] (!%p197_p6)  ;;  %vm1556_vm2 = vcmask (!%p197_p6), 130048  }
   0xc   : > { %v2605_v5 = vpack.c.bf16 (!%p197_p6), %v313_v4, %v312_v2  ;;  %v2609_v21 = vpack.c.bf16 (!%p197_p6), %v964_v19, %v963_v18  ;;  %v965_v22 = vld [vmem:[%s3584_s3 + $0x10] sm:$0xff] (!%p197_p6)  ;;  %v966_v23 = vld [vmem:[%s3584_s3 + $0x18] sm:$0xff] (!%p197_p6)  ;;  %v967_v25 = vld [vmem:[%s3584_s3 + $0x20] sm:$0xff] (!%p197_p6) }
   0xd   : > { %2602 = vmatprep.subr.bf16.mxu0 (!%p197_p6), %v2601_v3  ;;  %v2613_v24 = vpack.c.bf16 (!%p197_p6), %v966_v23, %v965_v22  ;;  %v968_v26 = vld [vmem:[%s3584_s3 + $0x28] sm:$0xff] (!%p197_p6)  ;;  %v969_v60 = vld [vmem:[%s3584_s3 + $0x30] sm:$0xff] (!%p197_p6)  ;;  %v970_v61 = vld [vmem:[%s3584_s3 + $0x38] sm:$0xff] (!%p197_p6) }
   0xe   : > { %2604 = vmatpush3.bf16.msra.mxu0 (!%p197_p6), %v2601_v3  ;;  %2625 = vmatprep.subr.bf16.mxu1 (!%p197_p6), %v2609_v21  ;;  %v2617_v29 = vpack.c.bf16 (!%p197_p6), %v968_v26, %v967_v25  ;;  %v2621_v62 = vpack.c.bf16 (!%p197_p6), %v970_v61, %v969_v60  ;;  %v3045_v18 = vld [vmem:[%s3583_s2] ss:$0 sm:$0xff] (!%p197_p6) }
   0xf   : > { %2606 = vmatprep.subr.bf16.mxu0 (!%p197_p6), %v2605_v5  ;;  %2629 = vmatpush3.bf16.msra.mxu1 (!%p197_p6), %v2609_v21 }
  0x10   : > { %2626 = vmatprep.subr.bf16.mxu1 (!%p197_p6), %v2613_v24 }
  0x12   : > { %s233_s11 = scalar_select %p232_p7, %s2878_s8, 74  ;;  %2608 = vmatpush3.bf16.msra.mxu0 %v2605_v5 }
  0x13   : > { %2610 = vmatprep.subr.bf16.mxu0 %v2609_v21  ;;  %2630 = vmatpush3.bf16.msra.mxu1 %v2613_v24  ;;  %s2242_s27 = sshll.u32 (%p2864_p4), %s2852_s21, 9 }
  0x14   : > { %s2094_s12 = sshll.u32 %s233_s11, 3  ;;  %2627 = vmatprep.subr.bf16.mxu1 %v2617_v29  ;;  %s3382_s30 = scalar_lea.vmem (%p2864_p4), %s3586_s5, %s2242_s27  }
  0x15   : > { %s2888_s15 = scalar_lea.vmem %s3581_s0, %s2094_s12 }
  0x16   : > { %v246_v6 = vld [vmem:[%s2888_s15] sm:$0xff]  ;;  %v247_v7 = vld [vmem:[%s2888_s15 + $0x8] sm:$0xff]  ;;  %v248_v8 = vld [vmem:[%s2888_s15 + $0x10] sm:$0xff] }
  0x17   : > { %2393 = vmatprep.mubr.msk.f32.mxu0 %vm321_vm0, %v246_v6  ;;  %v249_v9 = vld [vmem:[%s2888_s15 + $0x18] sm:$0xff]  ;;  %v250_v10 = vld [vmem:[%s2888_s15 + $0x20] sm:$0xff]  ;;  %v251_v11 = vld [vmem:[%s2888_s15 + $0x28] sm:$0xff]  ;;  %2631 = vmatpush3.bf16.msra.mxu1 %v2617_v29 }
  0x18   : > { %2394 = vmatmul.mubr.msk.f32.vlgmr.msra.gmra.mrb[0].mxu0 %vm321_vm0, %v247_v7  ;;  %v252_v12 = vld [vmem:[%s2888_s15 + $0x30] sm:$0xff]  ;;  %v253_v13 = vld [vmem:[%s2888_s15 + $0x38] sm:$0xff]  ;;  %v254_v14 = vld [vmem:[%s2888_s15 + $0x40] sm:$0xff]  ;;  %2628 = vmatprep.subr.bf16.mxu1 %v2621_v62 }
  0x19   : > { %2396 = vmatprep.mubr.msk.f32.mxu0 %vm321_vm0, %v248_v8  ;;  %v255_v15 = vld [vmem:[%s2888_s15 + $0x48] sm:$0xff]  ;;  %v256_v16 = vld [vmem:[%s2888_s15 + $0x50] sm:$0xff]  ;;  %v257_v17 = vld [vmem:[%s2888_s15 + $0x58] sm:$0xff]  ;;  %2612 = vmatpush3.bf16.msra.mxu0 %v2609_v21 }
  0x1a   : > { %v258_v20 = vld [vmem:[%s2888_s15 + $0x60] sm:$0xff]  ;;  %v259_v27 = vld [vmem:[%s2888_s15 + $0x68] sm:$0xff]  ;;  %v260_v28 = vld [vmem:[%s2888_s15 + $0x70] sm:$0xff]  ;;  %2614 = vmatprep.subr.bf16.mxu0 %v2613_v24 }
  0x1b   : > { %v261_v30 = vld [vmem:[%s2888_s15 + $0x78] sm:$0xff]  ;;  %v262_v31 = vld [vmem:[%s2888_s15 + $0x80] sm:$0xff]  ;;  %v263_v32 = vld [vmem:[%s2888_s15 + $0x88] sm:$0xff]  ;;  %2632 = vmatpush3.bf16.msra.mxu1 %v2621_v62 }
  0x1c   : > { %2397 = vmatmul.mubr.msk.f32.gmra.mrb[2].mxu0 %vm321_vm0, %v249_v9  ;;  %v264_v33 = vld [vmem:[%s2888_s15 + $0x90] sm:$0xff]  ;;  %v265_v34 = vld [vmem:[%s2888_s15 + $0x98] sm:$0xff]  ;;  %v266_v35 = vld [vmem:[%s2888_s15 + $0xa0] sm:$0xff] }
  0x1d   : > { %2399 = vmatprep.mubr.msk.f32.mxu0 %vm321_vm0, %v250_v10  ;;  %2616 = vmatpush3.bf16.msra.mxu0 %v2613_v24  ;;  %v267_v36 = vld [vmem:[%s2888_s15 + $0xa8] sm:$0xff]  ;;  %v268_v37 = vld [vmem:[%s2888_s15 + $0xb0] sm:$0xff]  ;;  %v269_v38 = vld [vmem:[%s2888_s15 + $0xb8] sm:$0xff] }
  0x1e   : > { %2618 = vmatprep.subr.bf16.mxu0 %v2617_v29  ;;  %v270_v39 = vld [vmem:[%s2888_s15 + $0xc0] sm:$0xff]  ;;  %v271_v40 = vld [vmem:[%s2888_s15 + $0xc8] sm:$0xff]  ;;  %v272_v41 = vld [vmem:[%s2888_s15 + $0xd0] sm:$0xff] }
  0x1f   : > { %v273_v42 = vld [vmem:[%s2888_s15 + $0xd8] sm:$0xff]  ;;  %v274_v43 = vld [vmem:[%s2888_s15 + $0xe0] sm:$0xff]  ;;  %v275_v44 = vld [vmem:[%s2888_s15 + $0xe8] sm:$0xff] }
  0x20   : > { %2400 = vmatmul.mubr.msk.f32.gmra.mrb[4].mxu0 %vm321_vm0, %v251_v11  ;;  %v276_v45 = vld [vmem:[%s2888_s15 + $0xf0] sm:$0xff]  ;;  %v277_v46 = vld [vmem:[%s2888_s15 + $0xf8] sm:$0xff]  ;;  %v278_v47 = vld [vmem:[%s2888_s15 + $0x100] sm:$0xff] }
  0x21   : > { %2402 = vmatprep.mubr.msk.f32.mxu0 %vm321_vm0, %v252_v12  ;;  %2620 = vmatpush3.bf16.msra.mxu0 %v2617_v29  ;;  %v279_v48 = vld [vmem:[%s2888_s15 + $0x108] sm:$0xff]  ;;  %v280_v49 = vld [vmem:[%s2888_s15 + $0x110] sm:$0xff]  ;;  %v281_v50 = vld [vmem:[%s2888_s15 + $0x118] sm:$0xff] }
  0x22   : > { %v282_v51 = vld [vmem:[%s2888_s15 + $0x120] sm:$0xff]  ;;  %v283_v52 = vld [vmem:[%s2888_s15 + $0x128] sm:$0xff]  ;;  %v284_v53 = vld [vmem:[%s2888_s15 + $0x130] sm:$0xff]  ;;  %2622 = vmatprep.subr.bf16.mxu0 %v2621_v62 }
  0x23   : > { %v285_v54 = vld [vmem:[%s2888_s15 + $0x138] sm:$0xff]  ;;  %v286_v55 = vld [vmem:[%s2888_s15 + $0x140] sm:$0xff]  ;;  %v287_v56 = vld [vmem:[%s2888_s15 + $0x148] sm:$0xff] }
  0x24   : > { %2403 = vmatmul.mubr.msk.f32.gmra.mrb[6].mxu0 %vm321_vm0, %v253_v13  ;;  %v288_v57 = vld [vmem:[%s2888_s15 + $0x150] sm:$0xff]  ;;  %v289_v58 = vld [vmem:[%s2888_s15 + $0x158] sm:$0xff]  ;;  %v290_v59 = vld [vmem:[%s2888_s15 + $0x160] sm:$0xff] }
  0x25   : > { %2405 = vmatprep.mubr.msk.f32.mxu0 %vm321_vm0, %v254_v14  ;;  %v291_v63 = vld [vmem:[%s2888_s15 + $0x168] sm:$0xff]  ;;  %v292_v0 = vld [vmem:[%s2888_s15 + $0x170] sm:$0xff]  ;;  %2624 = vmatpush3.bf16.msra.mxu0 %v2621_v62  ;;  %v293_v1 = vld [vmem:[%s2888_s15 + $0x178] sm:$0xff] }
  0x26   : > { %v294_v2 = vld [vmem:[%s2888_s15 + $0x180] sm:$0xff]  ;;  %v295_v3 = vld [vmem:[%s2888_s15 + $0x188] sm:$0xff]  ;;  %v296_v4 = vld [vmem:[%s2888_s15 + $0x190] sm:$0xff] }
  0x27   : > { %v297_v5 = vld [vmem:[%s2888_s15 + $0x198] sm:$0xff]  ;;  %v298_v6 = vld [vmem:[%s2888_s15 + $0x1a0] sm:$0xff]  ;;  %v299_v7 = vld [vmem:[%s2888_s15 + $0x1a8] sm:$0xff] }
  0x28   : > { %2406 = vmatmul.mubr.msk.f32.gmra.mrb[8].mxu0 %vm321_vm0, %v255_v15  ;;  %v300_v8 = vld [vmem:[%s2888_s15 + $0x1b0] sm:$0xff]  ;;  %v301_v9 = vld [vmem:[%s2888_s15 + $0x1b8] sm:$0xff]  ;;  %v302_v10 = vld [vmem:[%s2888_s15 + $0x1c0] sm:$0xff] }
  0x29   : > { %2408 = vmatprep.mubr.msk.f32.mxu0 %vm321_vm0, %v256_v16  ;;  %v303_v11 = vld [vmem:[%s2888_s15 + $0x1c8] sm:$0xff]  ;;  %v304_v12 = vld [vmem:[%s2888_s15 + $0x1d0] sm:$0xff]  ;;  %v305_v13 = vld [vmem:[%s2888_s15 + $0x1d8] sm:$0xff] }
  0x2a   : > { %v306_v14 = vld [vmem:[%s2888_s15 + $0x1e0] sm:$0xff]  ;;  %v307_v15 = vld [vmem:[%s2888_s15 + $0x1e8] sm:$0xff]  ;;  %v308_v16 = vld [vmem:[%s2888_s15 + $0x1f0] sm:$0xff] }
  0x2c   : > { %2409 = vmatmul.mubr.msk.f32.gmra.mrb[10].mxu0 %vm321_vm0, %v257_v17  ;;  %v309_v17 = vld [vmem:[%s2888_s15 + $0x1f8] sm:$0xff]  ;;  %s224_s15 = sand.u32 1, %s2767_s18   ;;  %s1629_s18 = ssub.s32 (%p2864_p4), 75, %s2878_s8 }
  0x2d   : > { %2411 = vmatprep.mubr.msk.f32.mxu0 %vm321_vm0, %v258_v20  ;;  %s2092_s17 = sshll.u32 %s224_s15, 9  ;;  %p1630_p8 = scmp.lt.s32.totalorder (%p2864_p4), %s1629_s18, 64 }
  0x2e   : > { %s3183_s24 = scalar_lea.vmem [#allocation2], %s2092_s17  }
  0x30   : > { %2412 = vmatmul.mubr.msk.f32.gmra.mrb[12].mxu0 %vm321_vm0, %v259_v27 }
  0x31   : > { %2414 = vmatprep.mubr.msk.f32.mxu0 %vm321_vm0, %v260_v28 }
  0x34   : > { %2415 = vmatmul.mubr.msk.f32.gmra.mrb[14].mxu0 %vm321_vm0, %v261_v30 }
  0x35   : > { %2417 = vmatprep.mubr.msk.f32.mxu0 %vm321_vm0, %v262_v31 }
  0x38   : > { %2418 = vmatmul.mubr.msk.f32.gmra.mrb[16].mxu0 %vm321_vm0, %v263_v32 }
  0x39   : > { %2420 = vmatprep.mubr.msk.f32.mxu0 %vm321_vm0, %v264_v33 }
  0x3c   : > { %2421 = vmatmul.mubr.msk.f32.gmra.mrb[18].mxu0 %vm321_vm0, %v265_v34 }
  0x3d   : > { %2423 = vmatprep.mubr.msk.f32.mxu0 %vm321_vm0, %v266_v35 }
  0x40   : > { %2424 = vmatmul.mubr.msk.f32.gmra.mrb[20].mxu0 %vm321_vm0, %v267_v36 }
  0x41   : > { %2426 = vmatprep.mubr.msk.f32.mxu0 %vm321_vm0, %v268_v37 }
  0x44   : > { %2427 = vmatmul.mubr.msk.f32.gmra.mrb[22].mxu0 %vm321_vm0, %v269_v38 }
  0x45   : > { %2429 = vmatprep.mubr.msk.f32.mxu0 %vm321_vm0, %v270_v39 }
  0x48   : > { %2430 = vmatmul.mubr.msk.f32.gmra.mrb[24].mxu0 %vm321_vm0, %v271_v40 }
  0x49   : > { %2432 = vmatprep.mubr.msk.f32.mxu0 %vm321_vm0, %v272_v41 }
  0x4c   : > { %2433 = vmatmul.mubr.msk.f32.gmra.mrb[26].mxu0 %vm321_vm0, %v273_v42 }
  0x4d   : > { %2435 = vmatprep.mubr.msk.f32.mxu0 %vm321_vm0, %v274_v43 }
  0x50   : > { %2436 = vmatmul.mubr.msk.f32.gmra.mrb[28].mxu0 %vm321_vm0, %v275_v44 }
  0x51   : > { %2438 = vmatprep.mubr.msk.f32.mxu0 %vm321_vm0, %v276_v45 }
  0x54   : > { %2439 = vmatmul.mubr.msk.f32.gmra.mrb[30].mxu0 %vm321_vm0, %v277_v46 }
  0x55   : > { %2441 = vmatprep.mubr.msk.f32.mxu0 %vm321_vm0, %v278_v47 }
  0x58   : > { %2442 = vmatmul.mubr.msk.f32.gmra.mrb[32].mxu0 %vm321_vm0, %v279_v48 }
  0x59   : > { %2444 = vmatprep.mubr.msk.f32.mxu0 %vm321_vm0, %v280_v49 }
  0x5c   : > { %2445 = vmatmul.mubr.msk.f32.gmra.mrb[34].mxu0 %vm321_vm0, %v281_v50 }
  0x5d   : > { %2447 = vmatprep.mubr.msk.f32.mxu0 %vm321_vm0, %v282_v51 }
  0x60   : > { %2448 = vmatmul.mubr.msk.f32.gmra.mrb[36].mxu0 %vm321_vm0, %v283_v52 }
  0x61   : > { %2450 = vmatprep.mubr.msk.f32.mxu0 %vm321_vm0, %v284_v53 }
  0x64   : > { %2451 = vmatmul.mubr.msk.f32.gmra.mrb[38].mxu0 %vm321_vm0, %v285_v54 }
  0x65   : > { %2453 = vmatprep.mubr.msk.f32.mxu0 %vm321_vm0, %v286_v55 }
  0x68   : > { %2454 = vmatmul.mubr.msk.f32.gmra.mrb[40].mxu0 %vm321_vm0, %v287_v56 }
  0x69   : > { %2456 = vmatprep.mubr.msk.f32.mxu0 %vm321_vm0, %v288_v57 }
  0x6c   : > { %2457 = vmatmul.mubr.msk.f32.gmra.mrb[42].mxu0 %vm321_vm0, %v289_v58 }
  0x6d   : > { %2459 = vmatprep.mubr.msk.f32.mxu0 %vm321_vm0, %v290_v59 }
  0x70   : > { %2460 = vmatmul.mubr.msk.f32.gmra.mrb[44].mxu0 %vm321_vm0, %v291_v63 }
  0x71   : > { %2462 = vmatprep.mubr.msk.f32.mxu0 %vm321_vm0, %v292_v0 }
  0x74   : > { %2463 = vmatmul.mubr.msk.f32.gmra.mrb[46].mxu0 %vm321_vm0, %v293_v1 }
  0x75   : > { %2465 = vmatprep.mubr.msk.f32.mxu0 %vm321_vm0, %v294_v2 }
  0x78   : > { %2466 = vmatmul.mubr.msk.f32.gmra.mrb[48].mxu0 %vm321_vm0, %v295_v3 }
  0x79   : > { %2468 = vmatprep.mubr.msk.f32.mxu0 %vm321_vm0, %v296_v4 }
  0x7c   : > { %2469 = vmatmul.mubr.msk.f32.gmra.mrb[50].mxu0 %vm321_vm0, %v297_v5 }
  0x7d   : > { %2471 = vmatprep.mubr.msk.f32.mxu0 %vm321_vm0, %v298_v6 }
  0x80   : > { %2472 = vmatmul.mubr.msk.f32.gmra.mrb[52].mxu0 %vm321_vm0, %v299_v7 }
  0x81   : > { %2474 = vmatprep.mubr.msk.f32.mxu0 %vm321_vm0, %v300_v8 }
  0x84   : > { %2475 = vmatmul.mubr.msk.f32.gmra.mrb[54].mxu0 %vm321_vm0, %v301_v9 }
  0x85   : > { %2477 = vmatprep.mubr.msk.f32.mxu0 %vm321_vm0, %v302_v10 }
  0x88   : > { %2478 = vmatmul.mubr.msk.f32.gmra.mrb[56].mxu0 %vm321_vm0, %v303_v11 }
  0x89   : > { %2480 = vmatprep.mubr.msk.f32.mxu0 %vm321_vm0, %v304_v12 }
  0x8c   : > { %2481 = vmatmul.mubr.msk.f32.gmra.mrb[58].mxu0 %vm321_vm0, %v305_v13 }
  0x8d   : > { %2483 = vmatprep.mubr.msk.f32.mxu0 %vm321_vm0, %v306_v14 }
  0x90   : > { %2484 = vmatmul.mubr.msk.f32.gmra.mrb[60].mxu0 %vm321_vm0, %v307_v15 }
  0x91   : > { %2486 = vmatprep.mubr.msk.f32.mxu0 %vm321_vm0, %v308_v16 }
  0x94   : > { %2487 = vmatmul.mubr.msk.f32.gmra.mrb[62].mxu0 %vm321_vm0, %v309_v17 }
  0xeb   : > { %v2395_v19 = vpop.f32.mrb[0].mxu0 }
  0xec   : > { %v586_v20 = vadd.f32 %v2395_v19, %v3045_v18  ;;  %v580_v21 = vpop.f32.mrb[1].mxu0 }
  0xed   : > { %v581_v22 = vadd.f32 %v3045_v18, %v580_v21 }
  0xee   : > { %v900_v25 = vmax.f32 %v586_v20, 0.0 }
  0xef   : > { %v899_v23 = vmax.f32 %v581_v22, 0.0  ;;  %v2398_v24 = vpop.f32.mrb[2].mxu0 }
  0xf0   : > { %v596_v26 = vadd.f32 %v2398_v24, %v3045_v18  ;;  %v590_v27 = vpop.f32.mrb[3].mxu0 }
  0xf1   : > { %v591_v28 = vadd.f32 %v3045_v18, %v590_v27  ;;  %2505 = vmatprep.mubr.msk.f32.mxu0 %vm978_vm1, %v899_v23 }
  0xf2   : > { %2506 = vmatmul.mubr.msk.f32.vlgmr.msra.gmra.mrb[64].mxu0 %vm978_vm1, %v900_v25  ;;  %v902_v31 = vmax.f32 %v596_v26, 0.0 }
  0xf3   : > { %v901_v29 = vmax.f32 %v591_v28, 0.0  ;;  %v2401_v30 = vpop.f32.mrb[4].mxu0 }
  0xf4   : > { %v606_v32 = vadd.f32 %v2401_v30, %v3045_v18  ;;  %v600_v33 = vpop.f32.mrb[5].mxu0 }
  0xf5   : > { %v601_v34 = vadd.f32 %v3045_v18, %v600_v33  ;;  %2508 = vmatprep.mubr.msk.f32.mxu1 %vm978_vm1, %v901_v29 }
  0xf6   : > { %2509 = vmatmul.mubr.msk.f32.vlgmr.msra.gmra.mrb[0].mxu1 %vm978_vm1, %v902_v31  ;;  %v904_v37 = vmax.f32 %v606_v32, 0.0 }
  0xf7   : > { %v903_v35 = vmax.f32 %v601_v34, 0.0  ;;  %v2404_v36 = vpop.f32.mrb[6].mxu0 }
  0xf8   : > { %v616_v38 = vadd.f32 %v2404_v36, %v3045_v18  ;;  %v610_v39 = vpop.f32.mrb[7].mxu0 }
  0xf9   : > { %v611_v40 = vadd.f32 %v3045_v18, %v610_v39  ;;  %2511 = vmatprep.mubr.msk.f32.mxu1 %vm978_vm1, %v903_v35 }
  0xfa   : > { %2512 = vmatmul.mubr.msk.f32.gmra.mrb[2].mxu1 %vm978_vm1, %v904_v37  ;;  %v906_v43 = vmax.f32 %v616_v38, 0.0 }
  0xfb   : > { %v905_v41 = vmax.f32 %v611_v40, 0.0  ;;  %v2407_v42 = vpop.f32.mrb[8].mxu0 }
  0xfc   : > { %v626_v44 = vadd.f32 %v2407_v42, %v3045_v18  ;;  %v620_v45 = vpop.f32.mrb[9].mxu0 }
  0xfd   : > { %v621_v46 = vadd.f32 %v3045_v18, %v620_v45  ;;  %2514 = vmatprep.mubr.msk.f32.mxu1 %vm978_vm1, %v905_v41 }
  0xfe   : > { %2515 = vmatmul.mubr.msk.f32.gmra.mrb[4].mxu1 %vm978_vm1, %v906_v43  ;;  %v908_v49 = vmax.f32 %v626_v44, 0.0 }
  0xff   : > { %v907_v47 = vmax.f32 %v621_v46, 0.0  ;;  %v2410_v48 = vpop.f32.mrb[10].mxu0 }
 0x100   : > { %v636_v50 = vadd.f32 %v2410_v48, %v3045_v18  ;;  %v630_v51 = vpop.f32.mrb[11].mxu0 }
 0x101   : > { %v631_v52 = vadd.f32 %v3045_v18, %v630_v51  ;;  %2517 = vmatprep.mubr.msk.f32.mxu1 %vm978_vm1, %v907_v47 }
 0x102   : > { %2518 = vmatmul.mubr.msk.f32.gmra.mrb[6].mxu1 %vm978_vm1, %v908_v49  ;;  %v910_v55 = vmax.f32 %v636_v50, 0.0 }
 0x103   : > { %v909_v53 = vmax.f32 %v631_v52, 0.0  ;;  %v2413_v54 = vpop.f32.mrb[12].mxu0 }
 0x104   : > { %v646_v56 = vadd.f32 %v2413_v54, %v3045_v18  ;;  %v640_v57 = vpop.f32.mrb[13].mxu0 }
 0x105   : > { %v641_v58 = vadd.f32 %v3045_v18, %v640_v57  ;;  %2520 = vmatprep.mubr.msk.f32.mxu1 %vm978_vm1, %v909_v53 }
 0x106   : > { %2521 = vmatmul.mubr.msk.f32.gmra.mrb[8].mxu1 %vm978_vm1, %v910_v55  ;;  %v912_v61 = vmax.f32 %v646_v56, 0.0 }
 0x107   : > { %v911_v59 = vmax.f32 %v641_v58, 0.0  ;;  %v2416_v60 = vpop.f32.mrb[14].mxu0 }
 0x108   : > { %v656_v62 = vadd.f32 %v2416_v60, %v3045_v18  ;;  %v650_v63 = vpop.f32.mrb[15].mxu0 }
 0x109   : > { %v651_v0 = vadd.f32 %v3045_v18, %v650_v63  ;;  %2523 = vmatprep.mubr.msk.f32.mxu1 %vm978_vm1, %v911_v59 }
 0x10a   : > { %2524 = vmatmul.mubr.msk.f32.gmra.mrb[10].mxu1 %vm978_vm1, %v912_v61  ;;  %v914_v3 = vmax.f32 %v656_v62, 0.0 }
 0x10b   : > { %v913_v1 = vmax.f32 %v651_v0, 0.0  ;;  %v2419_v2 = vpop.f32.mrb[16].mxu0 }
 0x10c   : > { %v666_v4 = vadd.f32 %v2419_v2, %v3045_v18  ;;  %v660_v5 = vpop.f32.mrb[17].mxu0 }
 0x10d   : > { %v661_v6 = vadd.f32 %v3045_v18, %v660_v5  ;;  %2526 = vmatprep.mubr.msk.f32.mxu1 %vm978_vm1, %v913_v1 }
 0x10e   : > { %2527 = vmatmul.mubr.msk.f32.gmra.mrb[12].mxu1 %vm978_vm1, %v914_v3  ;;  %v916_v9 = vmax.f32 %v666_v4, 0.0 }
 0x10f   : > { %v915_v7 = vmax.f32 %v661_v6, 0.0  ;;  %v2422_v8 = vpop.f32.mrb[18].mxu0 }
 0x110   : > { %v676_v10 = vadd.f32 %v2422_v8, %v3045_v18  ;;  %v670_v11 = vpop.f32.mrb[19].mxu0 }
 0x111   : > { %v671_v12 = vadd.f32 %v3045_v18, %v670_v11  ;;  %2529 = vmatprep.mubr.msk.f32.mxu1 %vm978_vm1, %v915_v7 }
 0x112   : > { %2530 = vmatmul.mubr.msk.f32.gmra.mrb[14].mxu1 %vm978_vm1, %v916_v9  ;;  %v918_v15 = vmax.f32 %v676_v10, 0.0 }
 0x113   : > { %v917_v13 = vmax.f32 %v671_v12, 0.0  ;;  %v2425_v14 = vpop.f32.mrb[20].mxu0 }
 0x114   : > { %v686_v16 = vadd.f32 %v2425_v14, %v3045_v18  ;;  %v680_v17 = vpop.f32.mrb[21].mxu0 }
 0x115   : > { %v681_v19 = vadd.f32 %v3045_v18, %v680_v17  ;;  %2532 = vmatprep.mubr.msk.f32.mxu1 %vm978_vm1, %v917_v13 }
 0x116   : > { %2533 = vmatmul.mubr.msk.f32.gmra.mrb[16].mxu1 %vm978_vm1, %v918_v15  ;;  %v920_v22 = vmax.f32 %v686_v16, 0.0 }
 0x117   : > { %v919_v20 = vmax.f32 %v681_v19, 0.0  ;;  %v2428_v21 = vpop.f32.mrb[22].mxu0 }
 0x118   : > { %v696_v23 = vadd.f32 %v2428_v21, %v3045_v18  ;;  %v690_v24 = vpop.f32.mrb[23].mxu0 }
 0x119   : > { %v691_v25 = vadd.f32 %v3045_v18, %v690_v24  ;;  %2535 = vmatprep.mubr.msk.f32.mxu1 %vm978_vm1, %v919_v20 }
 0x11a   : > { %2536 = vmatmul.mubr.msk.f32.gmra.mrb[18].mxu1 %vm978_vm1, %v920_v22  ;;  %v922_v28 = vmax.f32 %v696_v23, 0.0 }
 0x11b   : > { %v921_v26 = vmax.f32 %v691_v25, 0.0  ;;  %v2431_v27 = vpop.f32.mrb[24].mxu0 }
 0x11c   : > { %v706_v29 = vadd.f32 %v2431_v27, %v3045_v18  ;;  %v700_v30 = vpop.f32.mrb[25].mxu0 }
 0x11d   : > { %v701_v31 = vadd.f32 %v3045_v18, %v700_v30  ;;  %2538 = vmatprep.mubr.msk.f32.mxu1 %vm978_vm1, %v921_v26 }
 0x11e   : > { %2539 = vmatmul.mubr.msk.f32.gmra.mrb[20].mxu1 %vm978_vm1, %v922_v28  ;;  %v924_v34 = vmax.f32 %v706_v29, 0.0 }
 0x11f   : > { %v923_v32 = vmax.f32 %v701_v31, 0.0  ;;  %v2434_v33 = vpop.f32.mrb[26].mxu0 }
 0x120   : > { %v716_v35 = vadd.f32 %v2434_v33, %v3045_v18  ;;  %v710_v36 = vpop.f32.mrb[27].mxu0 }
 0x121   : > { %v711_v37 = vadd.f32 %v3045_v18, %v710_v36  ;;  %2541 = vmatprep.mubr.msk.f32.mxu1 %vm978_vm1, %v923_v32 }
 0x122   : > { %2542 = vmatmul.mubr.msk.f32.gmra.mrb[22].mxu1 %vm978_vm1, %v924_v34  ;;  %v926_v40 = vmax.f32 %v716_v35, 0.0 }
 0x123   : > { %v925_v38 = vmax.f32 %v711_v37, 0.0  ;;  %v2437_v39 = vpop.f32.mrb[28].mxu0 }
 0x124   : > { %v726_v41 = vadd.f32 %v2437_v39, %v3045_v18  ;;  %v720_v42 = vpop.f32.mrb[29].mxu0 }
 0x125   : > { %v721_v43 = vadd.f32 %v3045_v18, %v720_v42  ;;  %2544 = vmatprep.mubr.msk.f32.mxu1 %vm978_vm1, %v925_v38 }
 0x126   : > { %2545 = vmatmul.mubr.msk.f32.gmra.mrb[24].mxu1 %vm978_vm1, %v926_v40  ;;  %v928_v46 = vmax.f32 %v726_v41, 0.0 }
 0x127   : > { %v927_v44 = vmax.f32 %v721_v43, 0.0  ;;  %v2440_v45 = vpop.f32.mrb[30].mxu0 }
 0x128   : > { %v736_v47 = vadd.f32 %v2440_v45, %v3045_v18  ;;  %v730_v48 = vpop.f32.mrb[31].mxu0 }
 0x129   : > { %v731_v49 = vadd.f32 %v3045_v18, %v730_v48  ;;  %2547 = vmatprep.mubr.msk.f32.mxu1 %vm978_vm1, %v927_v44 }
 0x12a   : > { %2548 = vmatmul.mubr.msk.f32.gmra.mrb[26].mxu1 %vm978_vm1, %v928_v46  ;;  %v930_v52 = vmax.f32 %v736_v47, 0.0 }
 0x12b   : > { %v929_v50 = vmax.f32 %v731_v49, 0.0  ;;  %v2443_v51 = vpop.f32.mrb[32].mxu0 }
 0x12c   : > { %v746_v53 = vadd.f32 %v2443_v51, %v3045_v18  ;;  %v740_v54 = vpop.f32.mrb[33].mxu0 }
 0x12d   : > { %v741_v55 = vadd.f32 %v3045_v18, %v740_v54  ;;  %2550 = vmatprep.mubr.msk.f32.mxu1 %vm978_vm1, %v929_v50 }
 0x12e   : > { %2551 = vmatmul.mubr.msk.f32.gmra.mrb[28].mxu1 %vm978_vm1, %v930_v52  ;;  %v932_v58 = vmax.f32 %v746_v53, 0.0 }
 0x12f   : > { %v931_v56 = vmax.f32 %v741_v55, 0.0  ;;  %v2446_v57 = vpop.f32.mrb[34].mxu0 }
 0x130   : > { %v756_v59 = vadd.f32 %v2446_v57, %v3045_v18  ;;  %v750_v60 = vpop.f32.mrb[35].mxu0 }
 0x131   : > { %v751_v61 = vadd.f32 %v3045_v18, %v750_v60  ;;  %2553 = vmatprep.mubr.msk.f32.mxu1 %vm978_vm1, %v931_v56 }
 0x132   : > { %2554 = vmatmul.mubr.msk.f32.gmra.mrb[30].mxu1 %vm978_vm1, %v932_v58  ;;  %v934_v0 = vmax.f32 %v756_v59, 0.0 }
 0x133   : > { %v933_v62 = vmax.f32 %v751_v61, 0.0  ;;  %v2449_v63 = vpop.f32.mrb[36].mxu0 }
 0x134   : > { %v766_v1 = vadd.f32 %v2449_v63, %v3045_v18  ;;  %v760_v2 = vpop.f32.mrb[37].mxu0 }
 0x135   : > { %v761_v3 = vadd.f32 %v3045_v18, %v760_v2  ;;  %2556 = vmatprep.mubr.msk.f32.mxu1 %vm978_vm1, %v933_v62 }
 0x136   : > { %2557 = vmatmul.mubr.msk.f32.gmra.mrb[32].mxu1 %vm978_vm1, %v934_v0  ;;  %v936_v6 = vmax.f32 %v766_v1, 0.0 }
 0x137   : > { %v935_v4 = vmax.f32 %v761_v3, 0.0  ;;  %v2452_v5 = vpop.f32.mrb[38].mxu0 }
 0x138   : > { %v776_v7 = vadd.f32 %v2452_v5, %v3045_v18  ;;  %v770_v8 = vpop.f32.mrb[39].mxu0 }
 0x139   : > { %v771_v9 = vadd.f32 %v3045_v18, %v770_v8  ;;  %2559 = vmatprep.mubr.msk.f32.mxu1 %vm978_vm1, %v935_v4 }
 0x13a   : > { %2560 = vmatmul.mubr.msk.f32.gmra.mrb[34].mxu1 %vm978_vm1, %v936_v6  ;;  %v938_v12 = vmax.f32 %v776_v7, 0.0 }
 0x13b   : > { %v937_v10 = vmax.f32 %v771_v9, 0.0  ;;  %v2455_v11 = vpop.f32.mrb[40].mxu0 }
 0x13c   : > { %v786_v13 = vadd.f32 %v2455_v11, %v3045_v18  ;;  %v780_v14 = vpop.f32.mrb[41].mxu0 }
 0x13d   : > { %v781_v15 = vadd.f32 %v3045_v18, %v780_v14  ;;  %2562 = vmatprep.mubr.msk.f32.mxu1 %vm978_vm1, %v937_v10 }
 0x13e   : > { %2563 = vmatmul.mubr.msk.f32.gmra.mrb[36].mxu1 %vm978_vm1, %v938_v12  ;;  %v940_v19 = vmax.f32 %v786_v13, 0.0 }
 0x13f   : > { %v939_v16 = vmax.f32 %v781_v15, 0.0  ;;  %v2458_v17 = vpop.f32.mrb[42].mxu0 }
 0x140   : > { %v796_v20 = vadd.f32 %v2458_v17, %v3045_v18  ;;  %v790_v21 = vpop.f32.mrb[43].mxu0 }
 0x141   : > { %v791_v22 = vadd.f32 %v3045_v18, %v790_v21  ;;  %2565 = vmatprep.mubr.msk.f32.mxu1 %vm978_vm1, %v939_v16 }
 0x142   : > { %2566 = vmatmul.mubr.msk.f32.gmra.mrb[38].mxu1 %vm978_vm1, %v940_v19  ;;  %v942_v25 = vmax.f32 %v796_v20, 0.0 }
 0x143   : > { %v941_v23 = vmax.f32 %v791_v22, 0.0  ;;  %v2461_v24 = vpop.f32.mrb[44].mxu0  ;;  %v3179_v22 = vld [vmem:[%s3585_s4] ss:$0 sm:$0xff] }
 0x144   : > { %v806_v26 = vadd.f32 %v2461_v24, %v3045_v18  ;;  %v800_v27 = vpop.f32.mrb[45].mxu0 }
 0x145   : > { %v801_v28 = vadd.f32 %v3045_v18, %v800_v27  ;;  %2568 = vmatprep.mubr.msk.f32.mxu1 %vm978_vm1, %v941_v23 }
 0x146   : > { %2569 = vmatmul.mubr.msk.f32.gmra.mrb[40].mxu1 %vm978_vm1, %v942_v25  ;;  %v944_v31 = vmax.f32 %v806_v26, 0.0 }
 0x147   : > { %v943_v29 = vmax.f32 %v801_v28, 0.0  ;;  %v2464_v30 = vpop.f32.mrb[46].mxu0 }
 0x148   : > { %v816_v32 = vadd.f32 %v2464_v30, %v3045_v18  ;;  %v810_v33 = vpop.f32.mrb[47].mxu0 }
 0x149   : > { %v811_v34 = vadd.f32 %v3045_v18, %v810_v33  ;;  %2571 = vmatprep.mubr.msk.f32.mxu1 %vm978_vm1, %v943_v29 }
 0x14a   : > { %2572 = vmatmul.mubr.msk.f32.gmra.mrb[42].mxu1 %vm978_vm1, %v944_v31  ;;  %v946_v37 = vmax.f32 %v816_v32, 0.0 }
 0x14b   : > { %v945_v35 = vmax.f32 %v811_v34, 0.0  ;;  %v2467_v36 = vpop.f32.mrb[48].mxu0 }
 0x14c   : > { %v826_v38 = vadd.f32 %v2467_v36, %v3045_v18  ;;  %v820_v39 = vpop.f32.mrb[49].mxu0 }
 0x14d   : > { %v821_v40 = vadd.f32 %v3045_v18, %v820_v39  ;;  %2574 = vmatprep.mubr.msk.f32.mxu1 %vm978_vm1, %v945_v35 }
 0x14e   : > { %2575 = vmatmul.mubr.msk.f32.gmra.mrb[44].mxu1 %vm978_vm1, %v946_v37  ;;  %v948_v43 = vmax.f32 %v826_v38, 0.0 }
 0x14f   : > { %v947_v41 = vmax.f32 %v821_v40, 0.0  ;;  %v2470_v42 = vpop.f32.mrb[50].mxu0 }
 0x150   : > { %v836_v44 = vadd.f32 %v2470_v42, %v3045_v18  ;;  %v830_v45 = vpop.f32.mrb[51].mxu0 }
 0x151   : > { %v831_v46 = vadd.f32 %v3045_v18, %v830_v45  ;;  %2577 = vmatprep.mubr.msk.f32.mxu1 %vm978_vm1, %v947_v41 }
 0x152   : > { %2578 = vmatmul.mubr.msk.f32.gmra.mrb[46].mxu1 %vm978_vm1, %v948_v43  ;;  %v950_v49 = vmax.f32 %v836_v44, 0.0 }
 0x153   : > { %v949_v47 = vmax.f32 %v831_v46, 0.0  ;;  %v2473_v48 = vpop.f32.mrb[52].mxu0 }
 0x154   : > { %v846_v50 = vadd.f32 %v2473_v48, %v3045_v18  ;;  %v840_v51 = vpop.f32.mrb[53].mxu0 }
 0x155   : > { %v841_v52 = vadd.f32 %v3045_v18, %v840_v51  ;;  %2580 = vmatprep.mubr.msk.f32.mxu1 %vm978_vm1, %v949_v47 }
 0x156   : > { %2581 = vmatmul.mubr.msk.f32.gmra.mrb[48].mxu1 %vm978_vm1, %v950_v49  ;;  %v952_v55 = vmax.f32 %v846_v50, 0.0 }
 0x157   : > { %v951_v53 = vmax.f32 %v841_v52, 0.0  ;;  %v2476_v54 = vpop.f32.mrb[54].mxu0 }
 0x158   : > { %v856_v56 = vadd.f32 %v2476_v54, %v3045_v18  ;;  %v850_v57 = vpop.f32.mrb[55].mxu0 }
 0x159   : > { %v851_v58 = vadd.f32 %v3045_v18, %v850_v57  ;;  %2583 = vmatprep.mubr.msk.f32.mxu1 %vm978_vm1, %v951_v53 }
 0x15a   : > { %2584 = vmatmul.mubr.msk.f32.gmra.mrb[50].mxu1 %vm978_vm1, %v952_v55  ;;  %v954_v61 = vmax.f32 %v856_v56, 0.0 }
 0x15b   : > { %v953_v59 = vmax.f32 %v851_v58, 0.0  ;;  %v2479_v60 = vpop.f32.mrb[56].mxu0 }
 0x15c   : > { %v866_v62 = vadd.f32 %v2479_v60, %v3045_v18  ;;  %v860_v63 = vpop.f32.mrb[57].mxu0 }
 0x15d   : > { %v861_v0 = vadd.f32 %v3045_v18, %v860_v63  ;;  %2586 = vmatprep.mubr.msk.f32.mxu1 %vm978_vm1, %v953_v59 }
 0x15e   : > { %2587 = vmatmul.mubr.msk.f32.gmra.mrb[52].mxu1 %vm978_vm1, %v954_v61  ;;  %v956_v3 = vmax.f32 %v866_v62, 0.0 }
 0x15f   : > { %v955_v1 = vmax.f32 %v861_v0, 0.0  ;;  %v2482_v2 = vpop.f32.mrb[58].mxu0 }
 0x160   : > { %v876_v4 = vadd.f32 %v2482_v2, %v3045_v18  ;;  %v870_v5 = vpop.f32.mrb[59].mxu0 }
 0x161   : > { %v871_v6 = vadd.f32 %v3045_v18, %v870_v5  ;;  %2589 = vmatprep.mubr.msk.f32.mxu1 %vm978_vm1, %v955_v1 }
 0x162   : > { %2590 = vmatmul.mubr.msk.f32.gmra.mrb[54].mxu1 %vm978_vm1, %v956_v3  ;;  %v958_v9 = vmax.f32 %v876_v4, 0.0 }
 0x163   : > { %v957_v7 = vmax.f32 %v871_v6, 0.0  ;;  %v2485_v8 = vpop.f32.mrb[60].mxu0 }
 0x164   : > { %v886_v10 = vadd.f32 %v2485_v8, %v3045_v18  ;;  %v880_v11 = vpop.f32.mrb[61].mxu0 }
 0x165   : > { %v881_v12 = vadd.f32 %v3045_v18, %v880_v11  ;;  %2592 = vmatprep.mubr.msk.f32.mxu1 %vm978_vm1, %v957_v7 }
 0x166   : > { %2593 = vmatmul.mubr.msk.f32.gmra.mrb[56].mxu1 %vm978_vm1, %v958_v9  ;;  %v960_v15 = vmax.f32 %v886_v10, 0.0 }
 0x167   : > { %v959_v13 = vmax.f32 %v881_v12, 0.0  ;;  %v2488_v14 = vpop.f32.mrb[62].mxu0 }
 0x168   : > { %v896_v16 = vadd.f32 %v2488_v14, %v3045_v18  ;;  %v890_v17 = vpop.f32.mrb[63].mxu0 }
 0x169   : > { %v891_v19 = vadd.f32 %v3045_v18, %v890_v17  ;;  %2595 = vmatprep.mubr.msk.f32.mxu1 %vm978_vm1, %v959_v13 }
 0x16a   : > { %2596 = vmatmul.mubr.msk.f32.gmra.mrb[58].mxu1 %vm978_vm1, %v960_v15  ;;  %v962_v21 = vmax.f32 %v896_v16, 0.0 }
 0x16b   : > { %v961_v20 = vmax.f32 %v891_v19, 0.0 }
 0x16d   : > { %2598 = vmatprep.mubr.msk.f32.mxu1 %vm978_vm1, %v961_v20 }
 0x16e   : > { %2599 = vmatmul.mubr.msk.f32.gmra.mrb[60].mxu1 %vm978_vm1, %v962_v21 }
 0x1c5   : > { %v2507_v23 = vpop.f32.mrb[64].mxu0 }
 0x1c6   : > { %v1243_v18 = vadd.f32 %v2507_v23, %v3179_v22  ;;  %v1237_v24 = vpop.f32.mrb[65].mxu0 }
 0x1c7   : > { %v1238_v25 = vadd.f32 %v3179_v22, %v1237_v24 }
 0x1c8   : > { %1558 = vst.msk [vmem:[%s3183_s24 + $0x8] sm:$0xff] %vm1556_vm2, %v1243_v18 }
 0x1c9   : > { %1557 = vst.msk [vmem:[%s3183_s24] sm:$0xff] %vm1556_vm2, %v1238_v25  ;;  %v2510_v26 = vpop.f32.mrb[0].mxu1 }
 0x1ca   : > { %v1253_v27 = vadd.f32 %v2510_v26, %v3179_v22  ;;  %v1247_v28 = vpop.f32.mrb[1].mxu1 }
 0x1cb   : > { %v1248_v29 = vadd.f32 %v3179_v22, %v1247_v28 }
 0x1cc   : > { %1560 = vst.msk [vmem:[%s3183_s24 + $0x18] sm:$0xff] %vm1556_vm2, %v1253_v27 }
 0x1cd   : > { %1559 = vst.msk [vmem:[%s3183_s24 + $0x10] sm:$0xff] %vm1556_vm2, %v1248_v29  ;;  %v2513_v30 = vpop.f32.mrb[2].mxu1 }
 0x1ce   : > { %v1263_v31 = vadd.f32 %v2513_v30, %v3179_v22  ;;  %v1257_v32 = vpop.f32.mrb[3].mxu1 }
 0x1cf   : > { %v1258_v33 = vadd.f32 %v3179_v22, %v1257_v32 }
 0x1d0   : > { %1562 = vst.msk [vmem:[%s3183_s24 + $0x28] sm:$0xff] %vm1556_vm2, %v1263_v31 }
 0x1d1   : > { %1561 = vst.msk [vmem:[%s3183_s24 + $0x20] sm:$0xff] %vm1556_vm2, %v1258_v33  ;;  %v2516_v34 = vpop.f32.mrb[4].mxu1 }
 0x1d2   : > { %v1273_v35 = vadd.f32 %v2516_v34, %v3179_v22  ;;  %v1267_v36 = vpop.f32.mrb[5].mxu1 }
 0x1d3   : > { %v1268_v37 = vadd.f32 %v3179_v22, %v1267_v36 }
 0x1d4   : > { %1564 = vst.msk [vmem:[%s3183_s24 + $0x38] sm:$0xff] %vm1556_vm2, %v1273_v35 }
 0x1d5   : > { %1563 = vst.msk [vmem:[%s3183_s24 + $0x30] sm:$0xff] %vm1556_vm2, %v1268_v37  ;;  %v2519_v38 = vpop.f32.mrb[6].mxu1 }
 0x1d6   : > { %v1283_v39 = vadd.f32 %v2519_v38, %v3179_v22  ;;  %v1277_v40 = vpop.f32.mrb[7].mxu1 }
 0x1d7   : > { %v1278_v41 = vadd.f32 %v3179_v22, %v1277_v40 }
 0x1d8   : > { %1566 = vst.msk [vmem:[%s3183_s24 + $0x48] sm:$0xff] %vm1556_vm2, %v1283_v39 }
 0x1d9   : > { %1565 = vst.msk [vmem:[%s3183_s24 + $0x40] sm:$0xff] %vm1556_vm2, %v1278_v41  ;;  %v2522_v42 = vpop.f32.mrb[8].mxu1 }
 0x1da   : > { %v1293_v43 = vadd.f32 %v2522_v42, %v3179_v22  ;;  %v1287_v44 = vpop.f32.mrb[9].mxu1 }
 0x1db   : > { %v1288_v45 = vadd.f32 %v3179_v22, %v1287_v44 }
 0x1dc   : > { %1568 = vst.msk [vmem:[%s3183_s24 + $0x58] sm:$0xff] %vm1556_vm2, %v1293_v43 }
 0x1dd   : > { %1567 = vst.msk [vmem:[%s3183_s24 + $0x50] sm:$0xff] %vm1556_vm2, %v1288_v45  ;;  %v2525_v46 = vpop.f32.mrb[10].mxu1 }
 0x1de   : > { %v1303_v47 = vadd.f32 %v2525_v46, %v3179_v22  ;;  %v1297_v48 = vpop.f32.mrb[11].mxu1 }
 0x1df   : > { %v1298_v49 = vadd.f32 %v3179_v22, %v1297_v48 }
 0x1e0   : > { %1570 = vst.msk [vmem:[%s3183_s24 + $0x68] sm:$0xff] %vm1556_vm2, %v1303_v47 }
 0x1e1   : > { %1569 = vst.msk [vmem:[%s3183_s24 + $0x60] sm:$0xff] %vm1556_vm2, %v1298_v49  ;;  %v2528_v50 = vpop.f32.mrb[12].mxu1 }
 0x1e2   : > { %v1313_v51 = vadd.f32 %v2528_v50, %v3179_v22  ;;  %v1307_v52 = vpop.f32.mrb[13].mxu1 }
 0x1e3   : > { %v1308_v53 = vadd.f32 %v3179_v22, %v1307_v52 }
 0x1e4   : > { %1572 = vst.msk [vmem:[%s3183_s24 + $0x78] sm:$0xff] %vm1556_vm2, %v1313_v51 }
 0x1e5   : > { %1571 = vst.msk [vmem:[%s3183_s24 + $0x70] sm:$0xff] %vm1556_vm2, %v1308_v53  ;;  %v2531_v54 = vpop.f32.mrb[14].mxu1 }
 0x1e6   : > { %v1323_v55 = vadd.f32 %v2531_v54, %v3179_v22  ;;  %v1317_v56 = vpop.f32.mrb[15].mxu1 }
 0x1e7   : > { %v1318_v57 = vadd.f32 %v3179_v22, %v1317_v56 }
 0x1e8   : > { %1574 = vst.msk [vmem:[%s3183_s24 + $0x88] sm:$0xff] %vm1556_vm2, %v1323_v55 }
 0x1e9   : > { %1573 = vst.msk [vmem:[%s3183_s24 + $0x80] sm:$0xff] %vm1556_vm2, %v1318_v57  ;;  %v2534_v58 = vpop.f32.mrb[16].mxu1 }
 0x1ea   : > { %v1333_v59 = vadd.f32 %v2534_v58, %v3179_v22  ;;  %v1327_v60 = vpop.f32.mrb[17].mxu1 }
 0x1eb   : > { %v1328_v61 = vadd.f32 %v3179_v22, %v1327_v60 }
 0x1ec   : > { %1576 = vst.msk [vmem:[%s3183_s24 + $0x98] sm:$0xff] %vm1556_vm2, %v1333_v59 }
 0x1ed   : > { %1575 = vst.msk [vmem:[%s3183_s24 + $0x90] sm:$0xff] %vm1556_vm2, %v1328_v61  ;;  %v2537_v62 = vpop.f32.mrb[18].mxu1 }
 0x1ee   : > { %v1343_v63 = vadd.f32 %v2537_v62, %v3179_v22  ;;  %v1337_v0 = vpop.f32.mrb[19].mxu1 }
 0x1ef   : > { %v1338_v1 = vadd.f32 %v3179_v22, %v1337_v0 }
 0x1f0   : > { %1578 = vst.msk [vmem:[%s3183_s24 + $0xa8] sm:$0xff] %vm1556_vm2, %v1343_v63 }
 0x1f1   : > { %1577 = vst.msk [vmem:[%s3183_s24 + $0xa0] sm:$0xff] %vm1556_vm2, %v1338_v1  ;;  %v2540_v2 = vpop.f32.mrb[20].mxu1 }
 0x1f2   : > { %v1353_v3 = vadd.f32 %v2540_v2, %v3179_v22  ;;  %v1347_v4 = vpop.f32.mrb[21].mxu1 }
 0x1f3   : > { %v1348_v5 = vadd.f32 %v3179_v22, %v1347_v4 }
 0x1f4   : > { %1580 = vst.msk [vmem:[%s3183_s24 + $0xb8] sm:$0xff] %vm1556_vm2, %v1353_v3 }
 0x1f5   : > { %1579 = vst.msk [vmem:[%s3183_s24 + $0xb0] sm:$0xff] %vm1556_vm2, %v1348_v5  ;;  %v2543_v6 = vpop.f32.mrb[22].mxu1 }
 0x1f6   : > { %v1363_v7 = vadd.f32 %v2543_v6, %v3179_v22  ;;  %v1357_v8 = vpop.f32.mrb[23].mxu1 }
 0x1f7   : > { %v1358_v9 = vadd.f32 %v3179_v22, %v1357_v8 }
 0x1f8   : > { %1582 = vst.msk [vmem:[%s3183_s24 + $0xc8] sm:$0xff] %vm1556_vm2, %v1363_v7 }
 0x1f9   : > { %1581 = vst.msk [vmem:[%s3183_s24 + $0xc0] sm:$0xff] %vm1556_vm2, %v1358_v9  ;;  %v2546_v10 = vpop.f32.mrb[24].mxu1 }
 0x1fa   : > { %v1373_v11 = vadd.f32 %v2546_v10, %v3179_v22  ;;  %v1367_v12 = vpop.f32.mrb[25].mxu1 }
 0x1fb   : > { %v1368_v13 = vadd.f32 %v3179_v22, %v1367_v12 }
 0x1fc   : > { %1584 = vst.msk [vmem:[%s3183_s24 + $0xd8] sm:$0xff] %vm1556_vm2, %v1373_v11 }
 0x1fd   : > { %1583 = vst.msk [vmem:[%s3183_s24 + $0xd0] sm:$0xff] %vm1556_vm2, %v1368_v13  ;;  %v2549_v14 = vpop.f32.mrb[26].mxu1 }
 0x1fe   : > { %v1383_v15 = vadd.f32 %v2549_v14, %v3179_v22  ;;  %v1377_v16 = vpop.f32.mrb[27].mxu1 }
 0x1ff   : > { %v1378_v17 = vadd.f32 %v3179_v22, %v1377_v16 }
 0x200   : > { %1586 = vst.msk [vmem:[%s3183_s24 + $0xe8] sm:$0xff] %vm1556_vm2, %v1383_v15 }
 0x201   : > { %1585 = vst.msk [vmem:[%s3183_s24 + $0xe0] sm:$0xff] %vm1556_vm2, %v1378_v17  ;;  %v2552_v19 = vpop.f32.mrb[28].mxu1 }
 0x202   : > { %v1393_v20 = vadd.f32 %v2552_v19, %v3179_v22  ;;  %v1387_v21 = vpop.f32.mrb[29].mxu1 }
 0x203   : > { %v1388_v23 = vadd.f32 %v3179_v22, %v1387_v21 }
 0x204   : > { %1588 = vst.msk [vmem:[%s3183_s24 + $0xf8] sm:$0xff] %vm1556_vm2, %v1393_v20 }
 0x205   : > { %1587 = vst.msk [vmem:[%s3183_s24 + $0xf0] sm:$0xff] %vm1556_vm2, %v1388_v23  ;;  %v2555_v18 = vpop.f32.mrb[30].mxu1 }
 0x206   : > { %v1403_v24 = vadd.f32 %v2555_v18, %v3179_v22  ;;  %v1397_v25 = vpop.f32.mrb[31].mxu1 }
 0x207   : > { %v1398_v26 = vadd.f32 %v3179_v22, %v1397_v25 }
 0x208   : > { %1590 = vst.msk [vmem:[%s3183_s24 + $0x108] sm:$0xff] %vm1556_vm2, %v1403_v24 }
 0x209   : > { %1589 = vst.msk [vmem:[%s3183_s24 + $0x100] sm:$0xff] %vm1556_vm2, %v1398_v26  ;;  %v2558_v27 = vpop.f32.mrb[32].mxu1 }
 0x20a   : > { %v1413_v28 = vadd.f32 %v2558_v27, %v3179_v22  ;;  %v1407_v29 = vpop.f32.mrb[33].mxu1 }
 0x20b   : > { %v1408_v30 = vadd.f32 %v3179_v22, %v1407_v29 }
 0x20c   : > { %1592 = vst.msk [vmem:[%s3183_s24 + $0x118] sm:$0xff] %vm1556_vm2, %v1413_v28 }
 0x20d   : > { %1591 = vst.msk [vmem:[%s3183_s24 + $0x110] sm:$0xff] %vm1556_vm2, %v1408_v30  ;;  %v2561_v31 = vpop.f32.mrb[34].mxu1 }
 0x20e   : > { %v1423_v32 = vadd.f32 %v2561_v31, %v3179_v22  ;;  %v1417_v33 = vpop.f32.mrb[35].mxu1 }
 0x20f   : > { %v1418_v34 = vadd.f32 %v3179_v22, %v1417_v33 }
 0x210   : > { %1594 = vst.msk [vmem:[%s3183_s24 + $0x128] sm:$0xff] %vm1556_vm2, %v1423_v32 }
 0x211   : > { %1593 = vst.msk [vmem:[%s3183_s24 + $0x120] sm:$0xff] %vm1556_vm2, %v1418_v34  ;;  %v2564_v35 = vpop.f32.mrb[36].mxu1 }
 0x212   : > { %v1433_v36 = vadd.f32 %v2564_v35, %v3179_v22  ;;  %v1427_v37 = vpop.f32.mrb[37].mxu1 }
 0x213   : > { %v1428_v38 = vadd.f32 %v3179_v22, %v1427_v37 }
 0x214   : > { %1596 = vst.msk [vmem:[%s3183_s24 + $0x138] sm:$0xff] %vm1556_vm2, %v1433_v36 }
 0x215   : > { %1595 = vst.msk [vmem:[%s3183_s24 + $0x130] sm:$0xff] %vm1556_vm2, %v1428_v38  ;;  %v2567_v39 = vpop.f32.mrb[38].mxu1 }
 0x216   : > { %v1443_v40 = vadd.f32 %v2567_v39, %v3179_v22  ;;  %v1437_v41 = vpop.f32.mrb[39].mxu1 }
 0x217   : > { %v1438_v42 = vadd.f32 %v3179_v22, %v1437_v41 }
 0x218   : > { %1598 = vst.msk [vmem:[%s3183_s24 + $0x148] sm:$0xff] %vm1556_vm2, %v1443_v40 }
 0x219   : > { %1597 = vst.msk [vmem:[%s3183_s24 + $0x140] sm:$0xff] %vm1556_vm2, %v1438_v42  ;;  %v2570_v43 = vpop.f32.mrb[40].mxu1 }
 0x21a   : > { %v1453_v44 = vadd.f32 %v2570_v43, %v3179_v22  ;;  %v1447_v45 = vpop.f32.mrb[41].mxu1 }
 0x21b   : > { %v1448_v46 = vadd.f32 %v3179_v22, %v1447_v45 }
 0x21c   : > { %1600 = vst.msk [vmem:[%s3183_s24 + $0x158] sm:$0xff] %vm1556_vm2, %v1453_v44 }
 0x21d   : > { %1599 = vst.msk [vmem:[%s3183_s24 + $0x150] sm:$0xff] %vm1556_vm2, %v1448_v46  ;;  %v2573_v47 = vpop.f32.mrb[42].mxu1 }
 0x21e   : > { %v1463_v48 = vadd.f32 %v2573_v47, %v3179_v22  ;;  %v1457_v49 = vpop.f32.mrb[43].mxu1 }
 0x21f   : > { %v1458_v50 = vadd.f32 %v3179_v22, %v1457_v49 }
 0x220   : > { %1602 = vst.msk [vmem:[%s3183_s24 + $0x168] sm:$0xff] %vm1556_vm2, %v1463_v48 }
 0x221   : > { %1601 = vst.msk [vmem:[%s3183_s24 + $0x160] sm:$0xff] %vm1556_vm2, %v1458_v50  ;;  %v2576_v51 = vpop.f32.mrb[44].mxu1 }
 0x222   : > { %v1473_v52 = vadd.f32 %v2576_v51, %v3179_v22  ;;  %v1467_v53 = vpop.f32.mrb[45].mxu1 }
 0x223   : > { %v1468_v54 = vadd.f32 %v3179_v22, %v1467_v53 }
 0x224   : > { %1604 = vst.msk [vmem:[%s3183_s24 + $0x178] sm:$0xff] %vm1556_vm2, %v1473_v52 }
 0x225   : > { %1603 = vst.msk [vmem:[%s3183_s24 + $0x170] sm:$0xff] %vm1556_vm2, %v1468_v54  ;;  %v2579_v55 = vpop.f32.mrb[46].mxu1 }
 0x226   : > { %v1483_v56 = vadd.f32 %v2579_v55, %v3179_v22  ;;  %v1477_v57 = vpop.f32.mrb[47].mxu1 }
 0x227   : > { %v1478_v58 = vadd.f32 %v3179_v22, %v1477_v57 }
 0x228   : > { %1606 = vst.msk [vmem:[%s3183_s24 + $0x188] sm:$0xff] %vm1556_vm2, %v1483_v56 }
 0x229   : > { %1605 = vst.msk [vmem:[%s3183_s24 + $0x180] sm:$0xff] %vm1556_vm2, %v1478_v58  ;;  %v2582_v59 = vpop.f32.mrb[48].mxu1 }
 0x22a   : > { %v1493_v60 = vadd.f32 %v2582_v59, %v3179_v22  ;;  %v1487_v61 = vpop.f32.mrb[49].mxu1 }
 0x22b   : > { %v1488_v62 = vadd.f32 %v3179_v22, %v1487_v61 }
 0x22c   : > { %1608 = vst.msk [vmem:[%s3183_s24 + $0x198] sm:$0xff] %vm1556_vm2, %v1493_v60 }
 0x22d   : > { %1607 = vst.msk [vmem:[%s3183_s24 + $0x190] sm:$0xff] %vm1556_vm2, %v1488_v62  ;;  %v2585_v63 = vpop.f32.mrb[50].mxu1 }
 0x22e   : > { %v1503_v0 = vadd.f32 %v2585_v63, %v3179_v22  ;;  %v1497_v1 = vpop.f32.mrb[51].mxu1 }
 0x22f   : > { %v1498_v2 = vadd.f32 %v3179_v22, %v1497_v1 }
 0x230   : > { %1610 = vst.msk [vmem:[%s3183_s24 + $0x1a8] sm:$0xff] %vm1556_vm2, %v1503_v0 }
 0x231   : > { %1609 = vst.msk [vmem:[%s3183_s24 + $0x1a0] sm:$0xff] %vm1556_vm2, %v1498_v2  ;;  %v2588_v3 = vpop.f32.mrb[52].mxu1 }
 0x232   : > { %v1513_v4 = vadd.f32 %v2588_v3, %v3179_v22  ;;  %v1507_v5 = vpop.f32.mrb[53].mxu1 }
 0x233   : > { %v1508_v6 = vadd.f32 %v3179_v22, %v1507_v5 }
 0x234   : > { %1612 = vst.msk [vmem:[%s3183_s24 + $0x1b8] sm:$0xff] %vm1556_vm2, %v1513_v4 }
 0x235   : > { %1611 = vst.msk [vmem:[%s3183_s24 + $0x1b0] sm:$0xff] %vm1556_vm2, %v1508_v6  ;;  %v2591_v7 = vpop.f32.mrb[54].mxu1 }
 0x236   : > { %v1523_v8 = vadd.f32 %v2591_v7, %v3179_v22  ;;  %v1517_v9 = vpop.f32.mrb[55].mxu1 }
 0x237   : > { %v1518_v10 = vadd.f32 %v3179_v22, %v1517_v9 }
 0x238   : > { %1614 = vst.msk [vmem:[%s3183_s24 + $0x1c8] sm:$0xff] %vm1556_vm2, %v1523_v8 }
 0x239   : > { %1613 = vst.msk [vmem:[%s3183_s24 + $0x1c0] sm:$0xff] %vm1556_vm2, %v1518_v10  ;;  %v2594_v11 = vpop.f32.mrb[56].mxu1 }
 0x23a   : > { %v1533_v12 = vadd.f32 %v2594_v11, %v3179_v22  ;;  %v1527_v13 = vpop.f32.mrb[57].mxu1 }
 0x23b   : > { %v1528_v14 = vadd.f32 %v3179_v22, %v1527_v13 }
 0x23c   : > { %1616 = vst.msk [vmem:[%s3183_s24 + $0x1d8] sm:$0xff] %vm1556_vm2, %v1533_v12 }
 0x23d   : > { %1615 = vst.msk [vmem:[%s3183_s24 + $0x1d0] sm:$0xff] %vm1556_vm2, %v1528_v14  ;;  %v2597_v15 = vpop.f32.mrb[58].mxu1 }
 0x23e   : > { %v1543_v16 = vadd.f32 %v2597_v15, %v3179_v22  ;;  %v1537_v17 = vpop.f32.mrb[59].mxu1 }
 0x23f   : > { %v1538_v19 = vadd.f32 %v3179_v22, %v1537_v17  ;;  %1627 = sbr.rel (!%p2864_p4) target bundleno = 654 (0x28e), region = 44 }
 0x240   : > { %1618 = vst.msk [vmem:[%s3183_s24 + $0x1e8] sm:$0xff] %vm1556_vm2, %v1543_v16 }
 0x241   : > { %1617 = vst.msk [vmem:[%s3183_s24 + $0x1e0] sm:$0xff] %vm1556_vm2, %v1538_v19  ;;  %v2600_v20 = vpop.f32.mrb[60].mxu1 }
 0x242   : > { %v1553_v21 = vadd.f32 %v2600_v20, %v3179_v22  ;;  %v1547_v23 = vpop.f32.mrb[61].mxu1 }
 0x243   : > { %v1548_v18 = vadd.f32 %v3179_v22, %v1547_v23 }
 0x244   : > { %1620 = vst.msk [vmem:[%s3183_s24 + $0x1f8] sm:$0xff] %vm1556_vm2, %v1553_v21 }
 0x245   : > { %1619 = vst.msk [vmem:[%s3183_s24 + $0x1f0] sm:$0xff] %vm1556_vm2, %v1548_v18 }
 0x246   : > { %s3597_s18 = smov (!%p1630_p8, %s1629_s18), 64 }
 0x247   : > { %s2227_s6 = sshll.u32 %s3597_s18, 7 }
 0x248   : > { %p2230_p9 = scmp.eq.s32.totalorder %s2227_s6, 0 }
 0x249   : > { %s3388_s7 = sshrl.u32 (!%p2230_p9), %s3597_s18, 6 }
 0x24a   : > { %1638 = sbr.rel (%p2230_p9) target bundleno = 654 (0x28e), region = 48  ;;  %p2231_p10 = scmp.le.s32.totalorder (!%p2230_p9), %s3388_s7, 0 }
 0x251   : > { %2044 = sbr.rel (%p2231_p10) target bundleno = 633 (0x279), region = 124  ;;  %s3588_s21 = smov (!%p2231_p10), %s3382_s30 }
 0x252   : > { %s3589_s26 = smov (!%p2231_p10), %s3183_s24  ;;  %s3397_s8 = smov (!%p2231_p10), 0  }
 0x253   : > { %s3399_s9 = smov (!%p2231_p10), 0  }
 0x258 LB: >> { %v1826_v22 = vld [vmem:[%s2783_s26] sm:$0xff]  ;;  %v1828_v24 = vld [vmem:[%s2783_s26 + $0x8] sm:$0xff]  ;;  %v1830_v25 = vld [vmem:[%s2783_s26 + $0x10] sm:$0xff]  ;;  %s1954_s10 = sadd.s32 1, %s2787_s8  ;;  %s1820_s9 = sadd.s32 1, %s2791_s9   ;;  %s2791_s9 = sphi %s3399_s9, %s1820_s9   ;;  %s2787_s8 = sphi %s3397_s8, %s3592_s8   ;;  %s2783_s26 = sphi %s3589_s26, %s3591_s26   ;;  %s2779_s21 = sphi %s3588_s21, %s3590_s21  }
 0x259   : >> { %1827 = vst [vmem:[%s2779_s21] sm:$0xff] %v1826_v22  ;;  %1829 = vst [vmem:[%s2779_s21 + $0x8] sm:$0xff] %v1828_v24  ;;  %v1832_v26 = vld [vmem:[%s2783_s26 + $0x18] sm:$0xff]  ;;  %v1834_v27 = vld [vmem:[%s2783_s26 + $0x20] sm:$0xff]  ;;  %p1955_p11 = scmp.ge.s32.totalorder %s1954_s10, %s3388_s7  ;;  %p1819_p12 = scmp.ge.s32.totalorder %s1820_s9, %s3388_s7 }
 0x25a   : >> { %1831 = vst [vmem:[%s2779_s21 + $0x10] sm:$0xff] %v1830_v25  ;;  %v1836_v28 = vld [vmem:[%s2783_s26 + $0x28] sm:$0xff]  ;;  %1833 = vst [vmem:[%s2779_s21 + $0x18] sm:$0xff] %v1832_v26  ;;  %v1838_v29 = vld [vmem:[%s2783_s26 + $0x30] sm:$0xff] }
 0x25b   : >> { %1835 = vst [vmem:[%s2779_s21 + $0x20] sm:$0xff] %v1834_v27  ;;  %1837 = vst [vmem:[%s2779_s21 + $0x28] sm:$0xff] %v1836_v28  ;;  %v1840_v30 = vld [vmem:[%s2783_s26 + $0x38] sm:$0xff]  ;;  %v1842_v31 = vld [vmem:[%s2783_s26 + $0x40] sm:$0xff]  ;;  %s3599_s10 = smov (%p1955_p11, %s1954_s10), 0 }
 0x25c   : >> { %1839 = vst [vmem:[%s2779_s21 + $0x30] sm:$0xff] %v1838_v29  ;;  %1841 = vst [vmem:[%s2779_s21 + $0x38] sm:$0xff] %v1840_v30  ;;  %v1844_v32 = vld [vmem:[%s2783_s26 + $0x48] sm:$0xff]  ;;  %v1846_v33 = vld [vmem:[%s2783_s26 + $0x50] sm:$0xff]  ;;  %s2232_s11 = sshll.u32 %s3599_s10, 9  ;;  %s3592_s8 = smov %s3599_s10 }
 0x25d   : >> { %1843 = vst [vmem:[%s2779_s21 + $0x40] sm:$0xff] %v1842_v31  ;;  %v1848_v34 = vld [vmem:[%s2783_s26 + $0x58] sm:$0xff]  ;;  %1845 = vst [vmem:[%s2779_s21 + $0x48] sm:$0xff] %v1844_v32  ;;  %v1850_v35 = vld [vmem:[%s2783_s26 + $0x60] sm:$0xff]  ;;  %s3455_s12 = scalar_lea.vmem %s3183_s24, %s2232_s11 [#allocation2]   ;;  %s3458_s13 = scalar_lea.vmem %s3382_s30, %s2232_s11  }
 0x25e   : >> { %1847 = vst [vmem:[%s2779_s21 + $0x50] sm:$0xff] %v1846_v33  ;;  %1849 = vst [vmem:[%s2779_s21 + $0x58] sm:$0xff] %v1848_v34  ;;  %v1852_v36 = vld [vmem:[%s2783_s26 + $0x68] sm:$0xff]  ;;  %v1854_v37 = vld [vmem:[%s2783_s26 + $0x70] sm:$0xff] }
 0x25f   : >> { %1851 = vst [vmem:[%s2779_s21 + $0x60] sm:$0xff] %v1850_v35  ;;  %1853 = vst [vmem:[%s2779_s21 + $0x68] sm:$0xff] %v1852_v36  ;;  %v1856_v38 = vld [vmem:[%s2783_s26 + $0x78] sm:$0xff]  ;;  %v1858_v39 = vld [vmem:[%s2783_s26 + $0x80] sm:$0xff] }
 0x260   : >> { %1855 = vst [vmem:[%s2779_s21 + $0x70] sm:$0xff] %v1854_v37  ;;  %v1860_v40 = vld [vmem:[%s2783_s26 + $0x88] sm:$0xff]  ;;  %1857 = vst [vmem:[%s2779_s21 + $0x78] sm:$0xff] %v1856_v38  ;;  %v1862_v41 = vld [vmem:[%s2783_s26 + $0x90] sm:$0xff] }
 0x261   : >> { %1859 = vst [vmem:[%s2779_s21 + $0x80] sm:$0xff] %v1858_v39  ;;  %1861 = vst [vmem:[%s2779_s21 + $0x88] sm:$0xff] %v1860_v40  ;;  %v1864_v42 = vld [vmem:[%s2783_s26 + $0x98] sm:$0xff]  ;;  %v1866_v43 = vld [vmem:[%s2783_s26 + $0xa0] sm:$0xff] }
 0x262   : >> { %1863 = vst [vmem:[%s2779_s21 + $0x90] sm:$0xff] %v1862_v41  ;;  %1865 = vst [vmem:[%s2779_s21 + $0x98] sm:$0xff] %v1864_v42  ;;  %v1868_v44 = vld [vmem:[%s2783_s26 + $0xa8] sm:$0xff]  ;;  %v1870_v45 = vld [vmem:[%s2783_s26 + $0xb0] sm:$0xff] }
 0x263   : >> { %1867 = vst [vmem:[%s2779_s21 + $0xa0] sm:$0xff] %v1866_v43  ;;  %v1872_v46 = vld [vmem:[%s2783_s26 + $0xb8] sm:$0xff]  ;;  %1869 = vst [vmem:[%s2779_s21 + $0xa8] sm:$0xff] %v1868_v44  ;;  %v1874_v47 = vld [vmem:[%s2783_s26 + $0xc0] sm:$0xff] }
 0x264   : >> { %1871 = vst [vmem:[%s2779_s21 + $0xb0] sm:$0xff] %v1870_v45  ;;  %1873 = vst [vmem:[%s2779_s21 + $0xb8] sm:$0xff] %v1872_v46  ;;  %v1876_v48 = vld [vmem:[%s2783_s26 + $0xc8] sm:$0xff]  ;;  %v1878_v49 = vld [vmem:[%s2783_s26 + $0xd0] sm:$0xff] }
 0x265   : >> { %1875 = vst [vmem:[%s2779_s21 + $0xc0] sm:$0xff] %v1874_v47  ;;  %1877 = vst [vmem:[%s2779_s21 + $0xc8] sm:$0xff] %v1876_v48  ;;  %v1880_v50 = vld [vmem:[%s2783_s26 + $0xd8] sm:$0xff]  ;;  %v1882_v51 = vld [vmem:[%s2783_s26 + $0xe0] sm:$0xff] }
 0x266   : >> { %1879 = vst [vmem:[%s2779_s21 + $0xd0] sm:$0xff] %v1878_v49  ;;  %v1884_v52 = vld [vmem:[%s2783_s26 + $0xe8] sm:$0xff]  ;;  %1881 = vst [vmem:[%s2779_s21 + $0xd8] sm:$0xff] %v1880_v50  ;;  %v1886_v53 = vld [vmem:[%s2783_s26 + $0xf0] sm:$0xff] }
 0x267   : >> { %1883 = vst [vmem:[%s2779_s21 + $0xe0] sm:$0xff] %v1882_v51  ;;  %1885 = vst [vmem:[%s2779_s21 + $0xe8] sm:$0xff] %v1884_v52  ;;  %v1888_v54 = vld [vmem:[%s2783_s26 + $0xf8] sm:$0xff]  ;;  %v1890_v55 = vld [vmem:[%s2783_s26 + $0x100] sm:$0xff] }
 0x268   : >> { %1887 = vst [vmem:[%s2779_s21 + $0xf0] sm:$0xff] %v1886_v53  ;;  %1889 = vst [vmem:[%s2779_s21 + $0xf8] sm:$0xff] %v1888_v54  ;;  %v1892_v56 = vld [vmem:[%s2783_s26 + $0x108] sm:$0xff]  ;;  %v1894_v57 = vld [vmem:[%s2783_s26 + $0x110] sm:$0xff] }
 0x269   : >> { %1891 = vst [vmem:[%s2779_s21 + $0x100] sm:$0xff] %v1890_v55  ;;  %v1896_v58 = vld [vmem:[%s2783_s26 + $0x118] sm:$0xff]  ;;  %1893 = vst [vmem:[%s2779_s21 + $0x108] sm:$0xff] %v1892_v56  ;;  %v1898_v59 = vld [vmem:[%s2783_s26 + $0x120] sm:$0xff] }
 0x26a   : >> { %1895 = vst [vmem:[%s2779_s21 + $0x110] sm:$0xff] %v1894_v57  ;;  %1897 = vst [vmem:[%s2779_s21 + $0x118] sm:$0xff] %v1896_v58  ;;  %v1900_v60 = vld [vmem:[%s2783_s26 + $0x128] sm:$0xff]  ;;  %v1902_v61 = vld [vmem:[%s2783_s26 + $0x130] sm:$0xff] }
 0x26b   : >> { %1899 = vst [vmem:[%s2779_s21 + $0x120] sm:$0xff] %v1898_v59  ;;  %1901 = vst [vmem:[%s2779_s21 + $0x128] sm:$0xff] %v1900_v60  ;;  %v1904_v62 = vld [vmem:[%s2783_s26 + $0x138] sm:$0xff]  ;;  %v1906_v63 = vld [vmem:[%s2783_s26 + $0x140] sm:$0xff] }
 0x26c   : >> { %1903 = vst [vmem:[%s2779_s21 + $0x130] sm:$0xff] %v1902_v61  ;;  %v1908_v0 = vld [vmem:[%s2783_s26 + $0x148] sm:$0xff]  ;;  %1905 = vst [vmem:[%s2779_s21 + $0x138] sm:$0xff] %v1904_v62  ;;  %v1910_v1 = vld [vmem:[%s2783_s26 + $0x150] sm:$0xff] }
 0x26d   : >> { %1907 = vst [vmem:[%s2779_s21 + $0x140] sm:$0xff] %v1906_v63  ;;  %1909 = vst [vmem:[%s2779_s21 + $0x148] sm:$0xff] %v1908_v0  ;;  %v1912_v2 = vld [vmem:[%s2783_s26 + $0x158] sm:$0xff]  ;;  %v1914_v3 = vld [vmem:[%s2783_s26 + $0x160] sm:$0xff] }
 0x26e   : >> { %1911 = vst [vmem:[%s2779_s21 + $0x150] sm:$0xff] %v1910_v1  ;;  %1913 = vst [vmem:[%s2779_s21 + $0x158] sm:$0xff] %v1912_v2  ;;  %v1916_v4 = vld [vmem:[%s2783_s26 + $0x168] sm:$0xff]  ;;  %v1918_v5 = vld [vmem:[%s2783_s26 + $0x170] sm:$0xff] }
 0x26f   : >> { %1915 = vst [vmem:[%s2779_s21 + $0x160] sm:$0xff] %v1914_v3  ;;  %v1920_v6 = vld [vmem:[%s2783_s26 + $0x178] sm:$0xff]  ;;  %1917 = vst [vmem:[%s2779_s21 + $0x168] sm:$0xff] %v1916_v4  ;;  %v1922_v7 = vld [vmem:[%s2783_s26 + $0x180] sm:$0xff] }
 0x270   : >> { %1919 = vst [vmem:[%s2779_s21 + $0x170] sm:$0xff] %v1918_v5  ;;  %1921 = vst [vmem:[%s2779_s21 + $0x178] sm:$0xff] %v1920_v6  ;;  %v1924_v8 = vld [vmem:[%s2783_s26 + $0x188] sm:$0xff]  ;;  %v1926_v9 = vld [vmem:[%s2783_s26 + $0x190] sm:$0xff] }
 0x271   : >> { %1923 = vst [vmem:[%s2779_s21 + $0x180] sm:$0xff] %v1922_v7  ;;  %1925 = vst [vmem:[%s2779_s21 + $0x188] sm:$0xff] %v1924_v8  ;;  %v1928_v10 = vld [vmem:[%s2783_s26 + $0x198] sm:$0xff]  ;;  %v1930_v11 = vld [vmem:[%s2783_s26 + $0x1a0] sm:$0xff] }
 0x272   : >> { %1927 = vst [vmem:[%s2779_s21 + $0x190] sm:$0xff] %v1926_v9  ;;  %v1932_v12 = vld [vmem:[%s2783_s26 + $0x1a8] sm:$0xff]  ;;  %1929 = vst [vmem:[%s2779_s21 + $0x198] sm:$0xff] %v1928_v10  ;;  %v1934_v13 = vld [vmem:[%s2783_s26 + $0x1b0] sm:$0xff]  ;;  %1822 = sbr.rel (!%p1819_p12) target bundleno = 600 (0x258), region = 130 }
 0x273   : >> { %1931 = vst [vmem:[%s2779_s21 + $0x1a0] sm:$0xff] %v1930_v11  ;;  %1933 = vst [vmem:[%s2779_s21 + $0x1a8] sm:$0xff] %v1932_v12  ;;  %v1936_v14 = vld [vmem:[%s2783_s26 + $0x1b8] sm:$0xff]  ;;  %v1938_v15 = vld [vmem:[%s2783_s26 + $0x1c0] sm:$0xff] }
 0x274   : >> { %1935 = vst [vmem:[%s2779_s21 + $0x1b0] sm:$0xff] %v1934_v13  ;;  %1937 = vst [vmem:[%s2779_s21 + $0x1b8] sm:$0xff] %v1936_v14  ;;  %v1940_v16 = vld [vmem:[%s2783_s26 + $0x1c8] sm:$0xff]  ;;  %v1942_v17 = vld [vmem:[%s2783_s26 + $0x1d0] sm:$0xff] }
 0x275   : >> { %1939 = vst [vmem:[%s2779_s21 + $0x1c0] sm:$0xff] %v1938_v15  ;;  %v1944_v19 = vld [vmem:[%s2783_s26 + $0x1d8] sm:$0xff]  ;;  %1941 = vst [vmem:[%s2779_s21 + $0x1c8] sm:$0xff] %v1940_v16  ;;  %v1946_v20 = vld [vmem:[%s2783_s26 + $0x1e0] sm:$0xff] }
 0x276   : >> { %1943 = vst [vmem:[%s2779_s21 + $0x1d0] sm:$0xff] %v1942_v17  ;;  %1945 = vst [vmem:[%s2779_s21 + $0x1d8] sm:$0xff] %v1944_v19  ;;  %v1948_v21 = vld [vmem:[%s2783_s26 + $0x1e8] sm:$0xff]  ;;  %v1950_v23 = vld [vmem:[%s2783_s26 + $0x1f0] sm:$0xff] }
 0x277   : >> { %1947 = vst [vmem:[%s2779_s21 + $0x1e0] sm:$0xff] %v1946_v20  ;;  %1949 = vst [vmem:[%s2779_s21 + $0x1e8] sm:$0xff] %v1948_v21  ;;  %v1952_v18 = vld [vmem:[%s2783_s26 + $0x1f8] sm:$0xff]  ;;  %s3591_s26 = smov %s3455_s12 }
 0x278   : >> { %1951 = vst [vmem:[%s2779_s21 + $0x1f0] sm:$0xff] %v1950_v23  ;;  %1953 = vst [vmem:[%s2779_s21 + $0x1f8] sm:$0xff] %v1952_v18  ;;  %s3590_s21 = smov %s3458_s13 }
 0x279 PF: > { %s3563_s14 = sand.u32 63, %s3597_s18   ;;  %s2243_s16 = sshll.u32 %s3388_s7, 9 }
 0x27a   : > { %s1965_s15 = scalar_lea.vmem %s3183_s24, %s2243_s16 [#allocation2]   ;;  %s1967_s17 = scalar_lea.vmem %s3382_s30, %s2243_s16  }
 0x27b   : > { %p2237_p13 = scmp.le.s32.totalorder %s3563_s14, 0 }
 0x27c   : > { %s2793_s20 = smov (!%p2237_p13), %s1967_s17   ;;  %s2797_s23 = smov (!%p2237_p13), %s1965_s15  }
 0x27d   : > { %2058 = sbr.rel (%p2237_p13) target bundleno = 654 (0x28e), region = 135  ;;  %s2801_s27 = smov (!%p2237_p13), 0  }
 0x27e   : > { %s2805_s28 = smov (!%p2237_p13), 0  }
 0x284 LB: >> { %v1977_v22 = vld [vmem:[%s2799_s23] sm:$0xff]  ;;  %s1979_s18 = sadd.s32 1, %s2803_s27  ;;  %s1971_s28 = sadd.s32 1, %s2807_s28   ;;  %s2807_s28 = sphi %s2805_s28, %s1971_s28   ;;  %s2803_s27 = sphi %s2801_s27, %s2802_s27   ;;  %s2799_s23 = sphi %s2797_s23, %s1984_s23   ;;  %s2795_s20 = sphi %s2793_s20, %s1985_s20  }
 0x285   : >> { %1978 = vst [vmem:[%s2795_s20] sm:$0xff] %v1977_v22  ;;  %p1980_p0 = scmp.ge.s32.totalorder %s1979_s18, %s3563_s14  ;;  %p1970_p1 = scmp.ge.s32.totalorder %s1971_s28, %s3563_s14 }
 0x287   : >> { %s3601_s18 = smov (%p1980_p0, %s1979_s18), 0  ;;  %1973 = sbr.rel (!%p1970_p1) target bundleno = 644 (0x284), region = 141 }
 0x288   : >> { %s2238_s24 = sshll.u32 %s3601_s18, 3  ;;  %s2802_s27 = smov %s3601_s18  }
 0x289   : >> { %s1984_s23 = scalar_lea.vmem %s1965_s15, %s2238_s24 [#allocation2]   ;;  %s1985_s20 = scalar_lea.vmem %s1967_s17, %s2238_s24  }
 0x28e PF: > { %p12_p2 = scmp.ge.s32.totalorder %s2854_s22, 4   ;;  %s3593_s18 = smov %s2771_s19 }
 0x28f   : > { %s3594_s19 = smov %s2862_s25  ;;  %s3595_s20 = smov %s2854_s22 }
 0x290   :  { %14 = sbr.rel (!%p12_p2) target bundleno = 2 (0x2), region = 152 }

</bundles_post_ra>
